<compile_context>
chip_gen: v5e
topology: v5e:2x2
jax: 0.10.0
libtpu: 0.0.40
codegen_flags: <defaults>
</compile_context>

<pallas_src>
import numpy as np

import jax
import jax.numpy as jnp
from jax import lax
from jax.experimental import pallas as pl
from jax.experimental.pallas import tpu as pltpu

HIDDEN = 32
NUM_LAYERS = 3
KERNEL_SIZE = 9
BN_EPS = 1e-5


def seq_encoder_kernel(x_ref, pos_ref, w_ref, b_ref, out_ref):
    """One batch element: add positional emb, then NUM_LAYERS residual CNN blocks.

    x_ref  : (1, L, H)  token embeddings for this sequence
    pos_ref: (L, H)     positional embeddings
    w_ref  : (6, K*H, H) BN-folded conv weights, layout (tap*Cin, Cout)
    b_ref  : (6, 1, H)   BN-folded conv biases
    out_ref: (1, L, H)
    """
    L, H = pos_ref.shape
    KH = w_ref.shape[1]
    K = KH // H
    pad = K // 2

    x = x_ref[0] + pos_ref[...]                                  # (L, H)
    zpad = jnp.zeros((pad, H), jnp.float32)

    for layer in range(NUM_LAYERS):
        residue = x
        for c in range(2):
            idx = layer * 2 + c
            # 'same' padding along the sequence (sublane) axis.
            xp = jnp.concatenate([zpad, x, zpad], axis=0)        # (L + 2*pad, H)
            # im2col: one lane-concat -> a single (L, K*H) x (K*H, H) MXU matmul.
            x_unf = jnp.concatenate([xp[t:t + L, :] for t in range(K)], axis=-1)
            y = jnp.dot(x_unf, w_ref[idx],
                        preferred_element_type=jnp.float32) + b_ref[idx]
            # BN already folded into w/b; dropout is identity in eval mode.
            x = jnp.maximum(y, 0.0)                              # ReLU
        x = x + residue                                          # residual
    out_ref[0] = x


def _fold_bn(conv_w, conv_b, gamma, beta, mean, var):
    """Fold eval-mode BatchNorm1d into the preceding Conv1d (per out channel)."""
    s = gamma / jnp.sqrt(var + BN_EPS)                           # (H,)
    w_f = conv_w * s[:, None, None]                              # (O, I, K)
    b_f = (conv_b - mean) * s + beta                             # (H,)
    return w_f, b_f


def seq_encoder_pallas(tokens, params):
    """tokens: (B, L) int32 token ids.  Returns (B, H, L) f32, like torch forward."""
    B, L = tokens.shape
    H = params["emd"].shape[1]
    K = KERNEL_SIZE
    n_convs = NUM_LAYERS * 2

    # Index-based embedding gather in the wrapper (no one-hot matmuls).
    x_emb = jnp.take(params["emd"], tokens, axis=0)              # (B, L, H)
    pos = params["pos"][:L]                                      # (L, H)

    # Fold BN into each conv; pack all 6 convs into one weight / one bias tensor.
    w_list, b_list = [], []
    for i in range(NUM_LAYERS):
        for c in range(2):
            wf, bf = _fold_bn(params[f"conv_w_{i}_{c}"], params[f"conv_b_{i}_{c}"],
                              params[f"bn_g_{i}_{c}"], params[f"bn_b_{i}_{c}"],
                              params[f"bn_m_{i}_{c}"], params[f"bn_v_{i}_{c}"])
            # torch (O, I, K) -> (K*I, O) so the conv is one (L,K*H)x(K*H,H) matmul
            w_list.append(jnp.transpose(wf, (2, 1, 0)).reshape(K * H, H))
            b_list.append(bf.reshape(1, H))
    w_all = jnp.stack(w_list, axis=0)                            # (6, K*H, H)
    b_all = jnp.stack(b_list, axis=0)                            # (6, 1, H)

    flops = 2 * B * n_convs * L * (K * H) * H
    bytes_accessed = 4 * (x_emb.size + pos.size + w_all.size + b_all.size + B * L * H)

    out = pl.pallas_call(
        seq_encoder_kernel,
        out_shape=jax.ShapeDtypeStruct((B, L, H), jnp.float32),
        grid=(B,),
        in_specs=[
            pl.BlockSpec((1, L, H), lambda b: (b, 0, 0)),        # per-sequence tile
            pl.BlockSpec((L, H), lambda b: (0, 0)),              # pos emb (resident)
            pl.BlockSpec((n_convs, K * H, H), lambda b: (0, 0, 0)),
            pl.BlockSpec((n_convs, 1, H), lambda b: (0, 0, 0)),
        ],
        out_specs=pl.BlockSpec((1, L, H), lambda b: (b, 0, 0)),
        compiler_params=pltpu.CompilerParams(
            dimension_semantics=("parallel",),                   # v7x: 2 TCs
            vmem_limit_bytes=32 * 1024 * 1024),
        cost_estimate=pl.CostEstimate(flops=flops, transcendentals=0,
                                      bytes_accessed=bytes_accessed),
    )(x_emb, pos, w_all, b_all)

    # match torch: permute(0, 2, 1) -> (B, hidden, L)
    return jnp.transpose(out, (0, 2, 1))


# ----------------------- pure-JAX reference (different code path) -----------
def reference_forward(tokens, params):
    B, L = tokens.shape
    x = params["emd"][tokens] + params["pos"][:L]                # (B, L, H)
    x = jnp.transpose(x, (0, 2, 1))                              # (B, H, L)
    pad = KERNEL_SIZE // 2
    for i in range(NUM_LAYERS):
        res = x
        for c in range(2):
            w = params[f"conv_w_{i}_{c}"]                        # (O, I, K)
            b = params[f"conv_b_{i}_{c}"]
            y = lax.conv_general_dilated(
                x, w, window_strides=(1,), padding=[(pad, pad)],
                dimension_numbers=("NCH", "OIH", "NCH"),
                precision=lax.Precision.HIGHEST) + b[None, :, None]
            g = params[f"bn_g_{i}_{c}"][None, :, None]
            be = params[f"bn_b_{i}_{c}"][None, :, None]
            m = params[f"bn_m_{i}_{c}"][None, :, None]
            v = params[f"bn_v_{i}_{c}"][None, :, None]
            y = (y - m) / jnp.sqrt(v + BN_EPS) * g + be          # eval-mode BN
            x = jnp.maximum(y, 0.0)
        x = x + res
    return x


def init_params(key, vocab_size, hidden, pos_table_len):
    ks = iter(jax.random.split(key, 64))
    p = {
        "emd": jax.random.normal(next(ks), (vocab_size, hidden), jnp.float32),
        "pos": 0.1 * jax.random.normal(next(ks), (pos_table_len, hidden), jnp.float32),
    }
    for i in range(NUM_LAYERS):
        for c in range(2):
            p[f"conv_w_{i}_{c}"] = 0.05 * jax.random.normal(
                next(ks), (hidden, hidden, KERNEL_SIZE), jnp.float32)
            p[f"conv_b_{i}_{c}"] = 0.05 * jax.random.normal(next(ks), (hidden,), jnp.float32)
            p[f"bn_g_{i}_{c}"] = 1.0 + 0.1 * jax.random.normal(next(ks), (hidden,), jnp.float32)
            p[f"bn_b_{i}_{c}"] = 0.1 * jax.random.normal(next(ks), (hidden,), jnp.float32)
            p[f"bn_m_{i}_{c}"] = 0.1 * jax.random.normal(next(ks), (hidden,), jnp.float32)
            p[f"bn_v_{i}_{c}"] = 1.0 + 0.2 * jax.random.uniform(next(ks), (hidden,), jnp.float32)
    return p


if __name__ == "__main__":
    vocab_size = 21
    hidden = HIDDEN       # 32
    B, L = 2, 16
    pos_table_len = 32    # >= L (module default seq_len=1000; small for the demo)

    key = jax.random.PRNGKey(0)
    k_tok, k_par = jax.random.split(key)
    tokens = jax.random.randint(k_tok, (B, L), 0, vocab_size, dtype=jnp.int32)
    params = init_params(k_par, vocab_size, hidden, pos_table_len)

    out = seq_encoder_pallas(tokens, params)
    jax.block_until_ready(out)
    assert out.shape == (B, hidden, L)

    ref = reference_forward(tokens, params)
    np.testing.assert_allclose(np.asarray(out), np.asarray(ref), rtol=2e-2, atol=2e-2)
    print("KERNEL_OK")
</pallas_src>

<mosaic_0001>
module attributes {stable_mosaic.version = 11 : i64} {
  func.func @seq_encoder_kernel(%arg0: i32, %arg1: memref<1x16x32xf32, #tpu.memory_space<vmem>>, %arg2: memref<16x32xf32, #tpu.memory_space<vmem>>, %arg3: memref<6x288x32xf32, #tpu.memory_space<vmem>>, %arg4: memref<6x1x32xf32, #tpu.memory_space<vmem>>, %arg5: memref<1x16x32xf32, #tpu.memory_space<vmem>>) attributes {dimension_semantics = [#tpu.dimension_semantics<parallel>], iteration_bounds = array<i64: 2>, scalar_prefetch = 0 : i64, scratch_operands = 0 : i64, tpu.core_type = #tpu.core_type<tc>, window_params = [{transform_indices = @transform_0, window_bounds = array<i64: 1, 16, 32>}, {pipeline_mode = #tpu.pipeline_mode<synchronous>, transform_indices = @transform_1, window_bounds = array<i64: 16, 32>}, {pipeline_mode = #tpu.pipeline_mode<synchronous>, transform_indices = @transform_2, window_bounds = array<i64: 6, 288, 32>}, {pipeline_mode = #tpu.pipeline_mode<synchronous>, transform_indices = @transform_3, window_bounds = array<i64: 6, 1, 32>}, {transform_indices = @transform_4, window_bounds = array<i64: 1, 16, 32>}]} {
    %c0 = arith.constant 0 : index
    %c0_0 = arith.constant 0 : index
    %c0_1 = arith.constant 0 : index
    %0 = vector.load %arg1[%c0, %c0_0, %c0_1] : memref<1x16x32xf32, #tpu.memory_space<vmem>>, vector<1x16x32xf32>
    %1 = vector.shape_cast %0 : vector<1x16x32xf32> to vector<16x32xf32>
    %c0_2 = arith.constant 0 : index
    %c0_3 = arith.constant 0 : index
    %2 = vector.load %arg2[%c0_2, %c0_3] : memref<16x32xf32, #tpu.memory_space<vmem>>, vector<16x32xf32>
    %3 = arith.addf %1, %2 : vector<16x32xf32>
    %cst = arith.constant 0.000000e+00 : f32
    %4 = vector.broadcast %cst : f32 to vector<4x32xf32>
    %5 = tpu.concatenate %4, %3, %4 in 0 : vector<4x32xf32>, vector<16x32xf32>, vector<4x32xf32> -> vector<24x32xf32>
    %6 = vector.extract_strided_slice %5 {offsets = [0, 0], sizes = [16, 32], strides = [1, 1]} : vector<24x32xf32> to vector<16x32xf32>
    %7 = vector.extract_strided_slice %5 {offsets = [1, 0], sizes = [16, 32], strides = [1, 1]} : vector<24x32xf32> to vector<16x32xf32>
    %8 = vector.extract_strided_slice %5 {offsets = [2, 0], sizes = [16, 32], strides = [1, 1]} : vector<24x32xf32> to vector<16x32xf32>
    %9 = vector.extract_strided_slice %5 {offsets = [3, 0], sizes = [16, 32], strides = [1, 1]} : vector<24x32xf32> to vector<16x32xf32>
    %10 = vector.extract_strided_slice %5 {offsets = [4, 0], sizes = [16, 32], strides = [1, 1]} : vector<24x32xf32> to vector<16x32xf32>
    %11 = vector.extract_strided_slice %5 {offsets = [5, 0], sizes = [16, 32], strides = [1, 1]} : vector<24x32xf32> to vector<16x32xf32>
    %12 = vector.extract_strided_slice %5 {offsets = [6, 0], sizes = [16, 32], strides = [1, 1]} : vector<24x32xf32> to vector<16x32xf32>
    %13 = vector.extract_strided_slice %5 {offsets = [7, 0], sizes = [16, 32], strides = [1, 1]} : vector<24x32xf32> to vector<16x32xf32>
    %14 = vector.extract_strided_slice %5 {offsets = [8, 0], sizes = [16, 32], strides = [1, 1]} : vector<24x32xf32> to vector<16x32xf32>
    %15 = tpu.concatenate %6, %7, %8, %9, %10, %11, %12, %13, %14 in 1 : vector<16x32xf32>, vector<16x32xf32>, vector<16x32xf32>, vector<16x32xf32>, vector<16x32xf32>, vector<16x32xf32>, vector<16x32xf32>, vector<16x32xf32>, vector<16x32xf32> -> vector<16x288xf32>
    %c0_4 = arith.constant 0 : index
    %c0_5 = arith.constant 0 : index
    %c0_6 = arith.constant 0 : index
    %16 = vector.load %arg3[%c0_4, %c0_5, %c0_6] : memref<6x288x32xf32, #tpu.memory_space<vmem>>, vector<1x288x32xf32>
    %17 = vector.shape_cast %16 : vector<1x288x32xf32> to vector<288x32xf32>
    %cst_7 = arith.constant dense<0.000000e+00> : vector<16x32xf32>
    %18 = tpu.matmul %15, %17, %cst_7 {dimension_numbers = #tpu.dot_dimension_numbers<[1], [0], [0], [1], [0, 0, 1, 1], [], []>} : vector<16x288xf32>, vector<288x32xf32>, vector<16x32xf32> -> vector<16x32xf32>
    %c0_8 = arith.constant 0 : index
    %c0_9 = arith.constant 0 : index
    %c0_10 = arith.constant 0 : index
    %19 = vector.load %arg4[%c0_8, %c0_9, %c0_10] : memref<6x1x32xf32, #tpu.memory_space<vmem>>, vector<1x1x32xf32>
    %20 = vector.shape_cast %19 : vector<1x1x32xf32> to vector<1x32xf32>
    %21 = vector.broadcast %20 : vector<1x32xf32> to vector<16x32xf32>
    %22 = arith.addf %18, %21 : vector<16x32xf32>
    %cst_11 = arith.constant 0.000000e+00 : f32
    %23 = vector.broadcast %cst_11 : f32 to vector<16x32xf32>
    %24 = arith.maximumf %22, %23 : vector<16x32xf32>
    %25 = tpu.concatenate %4, %24, %4 in 0 : vector<4x32xf32>, vector<16x32xf32>, vector<4x32xf32> -> vector<24x32xf32>
    %26 = vector.extract_strided_slice %25 {offsets = [0, 0], sizes = [16, 32], strides = [1, 1]} : vector<24x32xf32> to vector<16x32xf32>
    %27 = vector.extract_strided_slice %25 {offsets = [1, 0], sizes = [16, 32], strides = [1, 1]} : vector<24x32xf32> to vector<16x32xf32>
    %28 = vector.extract_strided_slice %25 {offsets = [2, 0], sizes = [16, 32], strides = [1, 1]} : vector<24x32xf32> to vector<16x32xf32>
    %29 = vector.extract_strided_slice %25 {offsets = [3, 0], sizes = [16, 32], strides = [1, 1]} : vector<24x32xf32> to vector<16x32xf32>
    %30 = vector.extract_strided_slice %25 {offsets = [4, 0], sizes = [16, 32], strides = [1, 1]} : vector<24x32xf32> to vector<16x32xf32>
    %31 = vector.extract_strided_slice %25 {offsets = [5, 0], sizes = [16, 32], strides = [1, 1]} : vector<24x32xf32> to vector<16x32xf32>
    %32 = vector.extract_strided_slice %25 {offsets = [6, 0], sizes = [16, 32], strides = [1, 1]} : vector<24x32xf32> to vector<16x32xf32>
    %33 = vector.extract_strided_slice %25 {offsets = [7, 0], sizes = [16, 32], strides = [1, 1]} : vector<24x32xf32> to vector<16x32xf32>
    %34 = vector.extract_strided_slice %25 {offsets = [8, 0], sizes = [16, 32], strides = [1, 1]} : vector<24x32xf32> to vector<16x32xf32>
    %35 = tpu.concatenate %26, %27, %28, %29, %30, %31, %32, %33, %34 in 1 : vector<16x32xf32>, vector<16x32xf32>, vector<16x32xf32>, vector<16x32xf32>, vector<16x32xf32>, vector<16x32xf32>, vector<16x32xf32>, vector<16x32xf32>, vector<16x32xf32> -> vector<16x288xf32>
    %c1 = arith.constant 1 : index
    %c0_12 = arith.constant 0 : index
    %c0_13 = arith.constant 0 : index
    %36 = vector.load %arg3[%c1, %c0_12, %c0_13] : memref<6x288x32xf32, #tpu.memory_space<vmem>>, vector<1x288x32xf32>
    %37 = vector.shape_cast %36 : vector<1x288x32xf32> to vector<288x32xf32>
    %cst_14 = arith.constant dense<0.000000e+00> : vector<16x32xf32>
    %38 = tpu.matmul %35, %37, %cst_14 {dimension_numbers = #tpu.dot_dimension_numbers<[1], [0], [0], [1], [0, 0, 1, 1], [], []>} : vector<16x288xf32>, vector<288x32xf32>, vector<16x32xf32> -> vector<16x32xf32>
    %c1_15 = arith.constant 1 : index
    %c0_16 = arith.constant 0 : index
    %c0_17 = arith.constant 0 : index
    %39 = vector.load %arg4[%c1_15, %c0_16, %c0_17] : memref<6x1x32xf32, #tpu.memory_space<vmem>>, vector<1x1x32xf32>
    %40 = vector.shape_cast %39 : vector<1x1x32xf32> to vector<1x32xf32>
    %41 = vector.broadcast %40 : vector<1x32xf32> to vector<16x32xf32>
    %42 = arith.addf %38, %41 : vector<16x32xf32>
    %cst_18 = arith.constant 0.000000e+00 : f32
    %43 = vector.broadcast %cst_18 : f32 to vector<16x32xf32>
    %44 = arith.maximumf %42, %43 : vector<16x32xf32>
    %45 = arith.addf %44, %3 : vector<16x32xf32>
    %46 = tpu.concatenate %4, %45, %4 in 0 : vector<4x32xf32>, vector<16x32xf32>, vector<4x32xf32> -> vector<24x32xf32>
    %47 = vector.extract_strided_slice %46 {offsets = [0, 0], sizes = [16, 32], strides = [1, 1]} : vector<24x32xf32> to vector<16x32xf32>
    %48 = vector.extract_strided_slice %46 {offsets = [1, 0], sizes = [16, 32], strides = [1, 1]} : vector<24x32xf32> to vector<16x32xf32>
    %49 = vector.extract_strided_slice %46 {offsets = [2, 0], sizes = [16, 32], strides = [1, 1]} : vector<24x32xf32> to vector<16x32xf32>
    %50 = vector.extract_strided_slice %46 {offsets = [3, 0], sizes = [16, 32], strides = [1, 1]} : vector<24x32xf32> to vector<16x32xf32>
    %51 = vector.extract_strided_slice %46 {offsets = [4, 0], sizes = [16, 32], strides = [1, 1]} : vector<24x32xf32> to vector<16x32xf32>
    %52 = vector.extract_strided_slice %46 {offsets = [5, 0], sizes = [16, 32], strides = [1, 1]} : vector<24x32xf32> to vector<16x32xf32>
    %53 = vector.extract_strided_slice %46 {offsets = [6, 0], sizes = [16, 32], strides = [1, 1]} : vector<24x32xf32> to vector<16x32xf32>
    %54 = vector.extract_strided_slice %46 {offsets = [7, 0], sizes = [16, 32], strides = [1, 1]} : vector<24x32xf32> to vector<16x32xf32>
    %55 = vector.extract_strided_slice %46 {offsets = [8, 0], sizes = [16, 32], strides = [1, 1]} : vector<24x32xf32> to vector<16x32xf32>
    %56 = tpu.concatenate %47, %48, %49, %50, %51, %52, %53, %54, %55 in 1 : vector<16x32xf32>, vector<16x32xf32>, vector<16x32xf32>, vector<16x32xf32>, vector<16x32xf32>, vector<16x32xf32>, vector<16x32xf32>, vector<16x32xf32>, vector<16x32xf32> -> vector<16x288xf32>
    %c2 = arith.constant 2 : index
    %c0_19 = arith.constant 0 : index
    %c0_20 = arith.constant 0 : index
    %57 = vector.load %arg3[%c2, %c0_19, %c0_20] : memref<6x288x32xf32, #tpu.memory_space<vmem>>, vector<1x288x32xf32>
    %58 = vector.shape_cast %57 : vector<1x288x32xf32> to vector<288x32xf32>
    %cst_21 = arith.constant dense<0.000000e+00> : vector<16x32xf32>
    %59 = tpu.matmul %56, %58, %cst_21 {dimension_numbers = #tpu.dot_dimension_numbers<[1], [0], [0], [1], [0, 0, 1, 1], [], []>} : vector<16x288xf32>, vector<288x32xf32>, vector<16x32xf32> -> vector<16x32xf32>
    %c2_22 = arith.constant 2 : index
    %c0_23 = arith.constant 0 : index
    %c0_24 = arith.constant 0 : index
    %60 = vector.load %arg4[%c2_22, %c0_23, %c0_24] : memref<6x1x32xf32, #tpu.memory_space<vmem>>, vector<1x1x32xf32>
    %61 = vector.shape_cast %60 : vector<1x1x32xf32> to vector<1x32xf32>
    %62 = vector.broadcast %61 : vector<1x32xf32> to vector<16x32xf32>
    %63 = arith.addf %59, %62 : vector<16x32xf32>
    %cst_25 = arith.constant 0.000000e+00 : f32
    %64 = vector.broadcast %cst_25 : f32 to vector<16x32xf32>
    %65 = arith.maximumf %63, %64 : vector<16x32xf32>
    %66 = tpu.concatenate %4, %65, %4 in 0 : vector<4x32xf32>, vector<16x32xf32>, vector<4x32xf32> -> vector<24x32xf32>
    %67 = vector.extract_strided_slice %66 {offsets = [0, 0], sizes = [16, 32], strides = [1, 1]} : vector<24x32xf32> to vector<16x32xf32>
    %68 = vector.extract_strided_slice %66 {offsets = [1, 0], sizes = [16, 32], strides = [1, 1]} : vector<24x32xf32> to vector<16x32xf32>
    %69 = vector.extract_strided_slice %66 {offsets = [2, 0], sizes = [16, 32], strides = [1, 1]} : vector<24x32xf32> to vector<16x32xf32>
    %70 = vector.extract_strided_slice %66 {offsets = [3, 0], sizes = [16, 32], strides = [1, 1]} : vector<24x32xf32> to vector<16x32xf32>
    %71 = vector.extract_strided_slice %66 {offsets = [4, 0], sizes = [16, 32], strides = [1, 1]} : vector<24x32xf32> to vector<16x32xf32>
    %72 = vector.extract_strided_slice %66 {offsets = [5, 0], sizes = [16, 32], strides = [1, 1]} : vector<24x32xf32> to vector<16x32xf32>
    %73 = vector.extract_strided_slice %66 {offsets = [6, 0], sizes = [16, 32], strides = [1, 1]} : vector<24x32xf32> to vector<16x32xf32>
    %74 = vector.extract_strided_slice %66 {offsets = [7, 0], sizes = [16, 32], strides = [1, 1]} : vector<24x32xf32> to vector<16x32xf32>
    %75 = vector.extract_strided_slice %66 {offsets = [8, 0], sizes = [16, 32], strides = [1, 1]} : vector<24x32xf32> to vector<16x32xf32>
    %76 = tpu.concatenate %67, %68, %69, %70, %71, %72, %73, %74, %75 in 1 : vector<16x32xf32>, vector<16x32xf32>, vector<16x32xf32>, vector<16x32xf32>, vector<16x32xf32>, vector<16x32xf32>, vector<16x32xf32>, vector<16x32xf32>, vector<16x32xf32> -> vector<16x288xf32>
    %c3 = arith.constant 3 : index
    %c0_26 = arith.constant 0 : index
    %c0_27 = arith.constant 0 : index
    %77 = vector.load %arg3[%c3, %c0_26, %c0_27] : memref<6x288x32xf32, #tpu.memory_space<vmem>>, vector<1x288x32xf32>
    %78 = vector.shape_cast %77 : vector<1x288x32xf32> to vector<288x32xf32>
    %cst_28 = arith.constant dense<0.000000e+00> : vector<16x32xf32>
    %79 = tpu.matmul %76, %78, %cst_28 {dimension_numbers = #tpu.dot_dimension_numbers<[1], [0], [0], [1], [0, 0, 1, 1], [], []>} : vector<16x288xf32>, vector<288x32xf32>, vector<16x32xf32> -> vector<16x32xf32>
    %c3_29 = arith.constant 3 : index
    %c0_30 = arith.constant 0 : index
    %c0_31 = arith.constant 0 : index
    %80 = vector.load %arg4[%c3_29, %c0_30, %c0_31] : memref<6x1x32xf32, #tpu.memory_space<vmem>>, vector<1x1x32xf32>
    %81 = vector.shape_cast %80 : vector<1x1x32xf32> to vector<1x32xf32>
    %82 = vector.broadcast %81 : vector<1x32xf32> to vector<16x32xf32>
    %83 = arith.addf %79, %82 : vector<16x32xf32>
    %cst_32 = arith.constant 0.000000e+00 : f32
    %84 = vector.broadcast %cst_32 : f32 to vector<16x32xf32>
    %85 = arith.maximumf %83, %84 : vector<16x32xf32>
    %86 = arith.addf %85, %45 : vector<16x32xf32>
    %87 = tpu.concatenate %4, %86, %4 in 0 : vector<4x32xf32>, vector<16x32xf32>, vector<4x32xf32> -> vector<24x32xf32>
    %88 = vector.extract_strided_slice %87 {offsets = [0, 0], sizes = [16, 32], strides = [1, 1]} : vector<24x32xf32> to vector<16x32xf32>
    %89 = vector.extract_strided_slice %87 {offsets = [1, 0], sizes = [16, 32], strides = [1, 1]} : vector<24x32xf32> to vector<16x32xf32>
    %90 = vector.extract_strided_slice %87 {offsets = [2, 0], sizes = [16, 32], strides = [1, 1]} : vector<24x32xf32> to vector<16x32xf32>
    %91 = vector.extract_strided_slice %87 {offsets = [3, 0], sizes = [16, 32], strides = [1, 1]} : vector<24x32xf32> to vector<16x32xf32>
    %92 = vector.extract_strided_slice %87 {offsets = [4, 0], sizes = [16, 32], strides = [1, 1]} : vector<24x32xf32> to vector<16x32xf32>
    %93 = vector.extract_strided_slice %87 {offsets = [5, 0], sizes = [16, 32], strides = [1, 1]} : vector<24x32xf32> to vector<16x32xf32>
    %94 = vector.extract_strided_slice %87 {offsets = [6, 0], sizes = [16, 32], strides = [1, 1]} : vector<24x32xf32> to vector<16x32xf32>
    %95 = vector.extract_strided_slice %87 {offsets = [7, 0], sizes = [16, 32], strides = [1, 1]} : vector<24x32xf32> to vector<16x32xf32>
    %96 = vector.extract_strided_slice %87 {offsets = [8, 0], sizes = [16, 32], strides = [1, 1]} : vector<24x32xf32> to vector<16x32xf32>
    %97 = tpu.concatenate %88, %89, %90, %91, %92, %93, %94, %95, %96 in 1 : vector<16x32xf32>, vector<16x32xf32>, vector<16x32xf32>, vector<16x32xf32>, vector<16x32xf32>, vector<16x32xf32>, vector<16x32xf32>, vector<16x32xf32>, vector<16x32xf32> -> vector<16x288xf32>
    %c4 = arith.constant 4 : index
    %c0_33 = arith.constant 0 : index
    %c0_34 = arith.constant 0 : index
    %98 = vector.load %arg3[%c4, %c0_33, %c0_34] : memref<6x288x32xf32, #tpu.memory_space<vmem>>, vector<1x288x32xf32>
    %99 = vector.shape_cast %98 : vector<1x288x32xf32> to vector<288x32xf32>
    %cst_35 = arith.constant dense<0.000000e+00> : vector<16x32xf32>
    %100 = tpu.matmul %97, %99, %cst_35 {dimension_numbers = #tpu.dot_dimension_numbers<[1], [0], [0], [1], [0, 0, 1, 1], [], []>} : vector<16x288xf32>, vector<288x32xf32>, vector<16x32xf32> -> vector<16x32xf32>
    %c4_36 = arith.constant 4 : index
    %c0_37 = arith.constant 0 : index
    %c0_38 = arith.constant 0 : index
    %101 = vector.load %arg4[%c4_36, %c0_37, %c0_38] : memref<6x1x32xf32, #tpu.memory_space<vmem>>, vector<1x1x32xf32>
    %102 = vector.shape_cast %101 : vector<1x1x32xf32> to vector<1x32xf32>
    %103 = vector.broadcast %102 : vector<1x32xf32> to vector<16x32xf32>
    %104 = arith.addf %100, %103 : vector<16x32xf32>
    %cst_39 = arith.constant 0.000000e+00 : f32
    %105 = vector.broadcast %cst_39 : f32 to vector<16x32xf32>
    %106 = arith.maximumf %104, %105 : vector<16x32xf32>
    %107 = tpu.concatenate %4, %106, %4 in 0 : vector<4x32xf32>, vector<16x32xf32>, vector<4x32xf32> -> vector<24x32xf32>
    %108 = vector.extract_strided_slice %107 {offsets = [0, 0], sizes = [16, 32], strides = [1, 1]} : vector<24x32xf32> to vector<16x32xf32>
    %109 = vector.extract_strided_slice %107 {offsets = [1, 0], sizes = [16, 32], strides = [1, 1]} : vector<24x32xf32> to vector<16x32xf32>
    %110 = vector.extract_strided_slice %107 {offsets = [2, 0], sizes = [16, 32], strides = [1, 1]} : vector<24x32xf32> to vector<16x32xf32>
    %111 = vector.extract_strided_slice %107 {offsets = [3, 0], sizes = [16, 32], strides = [1, 1]} : vector<24x32xf32> to vector<16x32xf32>
    %112 = vector.extract_strided_slice %107 {offsets = [4, 0], sizes = [16, 32], strides = [1, 1]} : vector<24x32xf32> to vector<16x32xf32>
    %113 = vector.extract_strided_slice %107 {offsets = [5, 0], sizes = [16, 32], strides = [1, 1]} : vector<24x32xf32> to vector<16x32xf32>
    %114 = vector.extract_strided_slice %107 {offsets = [6, 0], sizes = [16, 32], strides = [1, 1]} : vector<24x32xf32> to vector<16x32xf32>
    %115 = vector.extract_strided_slice %107 {offsets = [7, 0], sizes = [16, 32], strides = [1, 1]} : vector<24x32xf32> to vector<16x32xf32>
    %116 = vector.extract_strided_slice %107 {offsets = [8, 0], sizes = [16, 32], strides = [1, 1]} : vector<24x32xf32> to vector<16x32xf32>
    %117 = tpu.concatenate %108, %109, %110, %111, %112, %113, %114, %115, %116 in 1 : vector<16x32xf32>, vector<16x32xf32>, vector<16x32xf32>, vector<16x32xf32>, vector<16x32xf32>, vector<16x32xf32>, vector<16x32xf32>, vector<16x32xf32>, vector<16x32xf32> -> vector<16x288xf32>
    %c5 = arith.constant 5 : index
    %c0_40 = arith.constant 0 : index
    %c0_41 = arith.constant 0 : index
    %118 = vector.load %arg3[%c5, %c0_40, %c0_41] : memref<6x288x32xf32, #tpu.memory_space<vmem>>, vector<1x288x32xf32>
    %119 = vector.shape_cast %118 : vector<1x288x32xf32> to vector<288x32xf32>
    %cst_42 = arith.constant dense<0.000000e+00> : vector<16x32xf32>
    %120 = tpu.matmul %117, %119, %cst_42 {dimension_numbers = #tpu.dot_dimension_numbers<[1], [0], [0], [1], [0, 0, 1, 1], [], []>} : vector<16x288xf32>, vector<288x32xf32>, vector<16x32xf32> -> vector<16x32xf32>
    %c5_43 = arith.constant 5 : index
    %c0_44 = arith.constant 0 : index
    %c0_45 = arith.constant 0 : index
    %121 = vector.load %arg4[%c5_43, %c0_44, %c0_45] : memref<6x1x32xf32, #tpu.memory_space<vmem>>, vector<1x1x32xf32>
    %122 = vector.shape_cast %121 : vector<1x1x32xf32> to vector<1x32xf32>
    %123 = vector.broadcast %122 : vector<1x32xf32> to vector<16x32xf32>
    %124 = arith.addf %120, %123 : vector<16x32xf32>
    %cst_46 = arith.constant 0.000000e+00 : f32
    %125 = vector.broadcast %cst_46 : f32 to vector<16x32xf32>
    %126 = arith.maximumf %124, %125 : vector<16x32xf32>
    %127 = arith.addf %126, %86 : vector<16x32xf32>
    %c0_47 = arith.constant 0 : index
    %c0_48 = arith.constant 0 : index
    %c0_49 = arith.constant 0 : index
    %128 = vector.load %arg5[%c0_47, %c0_48, %c0_49] : memref<1x16x32xf32, #tpu.memory_space<vmem>>, vector<1x16x32xf32>
    %129 = vector.shape_cast %128 : vector<1x16x32xf32> to vector<16x32xf32>
    %130 = vector.shape_cast %127 : vector<16x32xf32> to vector<1x16x32xf32>
    tpu.vector_store %arg5[%c0_47, %c0_48, %c0_49], %130 {strides = array<i32>} : memref<1x16x32xf32, #tpu.memory_space<vmem>>, vector<1x16x32xf32>,
    return
  }
  func.func @transform_0(%arg0: i32) -> (i32, i32, i32) {
    %c0_i32 = arith.constant 0 : i32
    %c0_i32_0 = arith.constant 0 : i32
    %c0_i32_1 = arith.constant 0 : i32
    return %arg0, %c0_i32, %c0_i32_0 : i32, i32, i32
  }
  func.func @transform_1(%arg0: i32) -> (i32, i32) {
    %c0_i32 = arith.constant 0 : i32
    %c0_i32_0 = arith.constant 0 : i32
    %c0_i32_1 = arith.constant 0 : i32
    return %c0_i32, %c0_i32_0 : i32, i32
  }
  func.func @transform_2(%arg0: i32) -> (i32, i32, i32) {
    %c0_i32 = arith.constant 0 : i32
    %c0_i32_0 = arith.constant 0 : i32
    %c0_i32_1 = arith.constant 0 : i32
    %c0_i32_2 = arith.constant 0 : i32
    return %c0_i32, %c0_i32_0, %c0_i32_1 : i32, i32, i32
  }
  func.func @transform_3(%arg0: i32) -> (i32, i32, i32) {
    %c0_i32 = arith.constant 0 : i32
    %c0_i32_0 = arith.constant 0 : i32
    %c0_i32_1 = arith.constant 0 : i32
    %c0_i32_2 = arith.constant 0 : i32
    return %c0_i32, %c0_i32_0, %c0_i32_1 : i32, i32, i32
  }
  func.func @transform_4(%arg0: i32) -> (i32, i32, i32) {
    %c0_i32 = arith.constant 0 : i32
    %c0_i32_0 = arith.constant 0 : i32
    %c0_i32_1 = arith.constant 0 : i32
    return %arg0, %c0_i32, %c0_i32_0 : i32, i32, i32
  }
}

</mosaic_0001>

<bundles_post_ra>
// kernel: tpu_custom_call.1
= control target key start
LH: loop header
LB: loop body
LE: loop exit
PB: predicated region body
PF: predicated region fallthrough
CT: control target
= control target key end

     0   :  { %9 = vsyncpa [#allocation3], 0  ;;  %s3274_s0 = inlined_call_operand.vmem [shape: f32[2,16,32], index: 0, kind: input, shape index: {}]   ;;  %s3275_s1 = inlined_call_operand.vmem [shape: f32[16,32], index: 1, kind: input, shape index: {}]   ;;  %s3276_s2 = inlined_call_operand.vmem [shape: f32[6,288,32], index: 2, kind: input, shape index: {}]   ;;  %s3277_s3 = inlined_call_operand.vmem [shape: f32[6,1,32], index: 3, kind: input, shape index: {}]   ;;  %s3278_s4 = inlined_call_operand.hbm [shape: f32[2,16,32], index: 4, kind: output, shape index: {}]  }
   0x1   :  { %11 = vsyncpa [#allocation3 + $0x1], 0  ;;  %s2075_s15 = smov 0   ;;  %s2077_s16 = smov 0  }
   0x2   :  { %s2079_s17 = smov 0   ;;  %s2081_s18 = smov 0  }
   0x3 LB: > { %s2096_s19 = sadd.s32 4294967295, %s2043_s18   ;;  %s1580_s20 = sadd.s32 4294967294, %s2043_s18   ;;  %s2043_s18 = sphi %s2081_s18, %s3284_s18   ;;  %s2039_s17 = sphi %s2079_s17, %s3283_s17   ;;  %s2035_s16 = sphi %s2077_s16, %s3282_s16   ;;  %s2031_s15 = sphi %s2075_s15, %s3281_s15  }
   0x4   : > { %s2100_s21 = sadd.s32 1, %s2043_s18   ;;  %s113_s22 = sadd.s32 1, %s2039_s17 }
   0x5   : > { %s110_s23 = ssub.s32 %s2043_s18, %s2100_s21  ;;  %p123_p0 = scmp.ne.s32.totalorder %s2039_s17, %s2035_s16 }
   0x6   : > { %p111_p1 = scmp.eq.s32.totalorder %s110_s23, 0  ;;  %p124_p2 = scmp.eq.s32.totalorder %s2096_s19, 1 }
   0x7   : > { %p129_p3 = scmp.ne.s32.totalorder %s2035_s16, %s2031_s15  ;;  %p130_p4 = scmp.eq.s32.totalorder %s1580_s20, 1 }
   0x8   : > { %s2111_s24 = scalar_select %p111_p1, %s2039_s17, %s113_s22  }
   0x9   : > { %p2113_p5 = por %p124_p2, %p123_p0  ;;  %p2117_p6 = por %p130_p4, %p129_p3 }
   0xa   : > { %p1583_p7 = scmp.ge.s32.totalorder %s2043_s18, 1  ;;  %p165_p8 = scmp.lt.s32.totalorder %s2043_s18, 3 }
   0xc   : > { %p166_p9 = pnand %p1583_p7, %p165_p8 }
   0xd   : > { %p191_p10 = scmp.lt.s32.totalorder (!%p166_p9), %s2096_s19, 1  ;;  %s2045_s10 = smov (!%p166_p9), 96  }
   0xe   : > { %169 = sbr.rel (%p166_p9) target bundleno = 1691 (0x69b), region = 36  ;;  %s2046_s13 = smov (!%p166_p9), 32  }
   0xf   : > { %s2047_s28 = smov (!%p166_p9), 64   ;;  %s188_s29 = sand.u32 (!%p166_p9), 1, %s2035_s16  }
  0x10   : > { %s1584_s30 = sshll.u32 (!%p166_p9), %s188_s29, 4 }
  0x11   : > { %s190_s8 = scalar_lea.vmem (!%p166_p9), [#allocation2], %s1584_s30 }
  0x12   : > { %s1515_s9 = sshll.u32 (!%p166_p9), %s190_s8, 4  ;;  %s1516_s9 = int_to_ptr.vmem [resolvable:$true] %s1515_s9 }
  0x13   : > { %s192_s27 = scalar_select %p191_p10, %s2096_s19, 1  ;;  %v324_v0 = vld [vmem:[%s3276_s2 + $0x78] sm:$0xff]  ;;  %v323_v2 = vld [vmem:[%s3276_s2 + $0x70] sm:$0xff]  ;;  %v198_v3 = vld [vmem:[%s3275_s1] sm:$0xff]  ;;  %vm204_vm0 = vcmask 1043456   ;;  %vm239_vm1 = vcmask 1044480  }
  0x14   : > { %v340_v1 = vld [vmem:[%s3276_s2 + $0xf8] sm:$0xff]  ;;  %353 = vmatpush.msra.mxu0 %v324_v0  ;;  %v339_v4 = vld [vmem:[%s3276_s2 + $0xf0] sm:$0xff]  ;;  %v199_v5 = vld [vmem:[%s3275_s1 + $0x8] sm:$0xff]  ;;  %vm282_vm2 = vcmask 1040384   ;;  %vm215_vm3 = vcmask 1046528   ;;  %vm258_vm4 = vcmask 1042432  }
  0x15   : > { %376 = vmatpush.msra.mxu1 %v340_v1  ;;  %s1789_s12 = sshll.u32 %s192_s27, 4  ;;  %v322_v6 = vld [vmem:[%s3276_s2 + $0x68] sm:$0xff]  ;;  %v321_v8 = vld [vmem:[%s3276_s2 + $0x60] sm:$0xff]  ;;  %v320_v14 = vld [vmem:[%s3276_s2 + $0x58] sm:$0xff]  ;;  %vm227_vm5 = vcmask 1045504   ;;  %vm270_vm6 = vcmask 1041408  }
  0x16   : > { %v338_v7 = vld [vmem:[%s3276_s2 + $0xe8] sm:$0xff]  ;;  %s195_s5 = scalar_lea.vmem %s3274_s0, %s1789_s12  ;;  %354 = vmatpush.msra.mxu0 %v323_v2  ;;  %v337_v11 = vld [vmem:[%s3276_s2 + $0xe0] sm:$0xff]  ;;  %v336_v15 = vld [vmem:[%s3276_s2 + $0xd8] sm:$0xff]  ;;  %vm294_vm7 = vcmask 261120   ;;  %vm297_vm8 = vcmask 523264   ;;  %vm300_vm9 = vcmask 785408  }
  0x17   : > { %377 = vmatpush.msra.mxu1 %v339_v4  ;;  %v196_v9 = vld [vmem:[%s195_s5] sm:$0xff]  ;;  %v197_v10 = vld [vmem:[%s195_s5 + $0x8] sm:$0xff]  ;;  %v319_v18 = vld [vmem:[%s3276_s2 + $0x50] sm:$0xff]  ;;  %s1790_s5 = sshll.u32 %s2096_s19, 4  ;;  %s1503_s19 = scalar_lea.sflag [#allocation3], %s188_s29 }
  0x18   : > { %v2158_v12 = vadd.f32 %v198_v3, %v196_v9  ;;  %v2160_v13 = vadd.f32 %v199_v5, %v197_v10  ;;  %355 = vmatpush.msra.mxu0 %v322_v6  ;;  %v335_v19 = vld [vmem:[%s3276_s2 + $0xd0] sm:$0xff]  ;;  %v318_v27 = vld [vmem:[%s3276_s2 + $0x48] sm:$0xff]  ;;  %v317_v37 = vld [vmem:[%s3276_s2 + $0x40] sm:$0xff]  ;;  %s1514_s7 = scalar_lea.hbm %s3278_s4, %s1790_s5 }
  0x19   : > { %378 = vmatpush.msra.mxu1 %v338_v7  ;;  %v334_v28 = vld [vmem:[%s3276_s2 + $0xc8] sm:$0xff]  ;;  %v333_v42 = vld [vmem:[%s3276_s2 + $0xc0] sm:$0xff]  ;;  %v316_v45 = vld [vmem:[%s3276_s2 + $0x38] sm:$0xff]  ;;  %s1517_s11 = sshll.u32 %s1514_s7, 4  ;;  %s1518_s11 = int_to_ptr.hbm [resolvable:$true] %s1517_s11 }
  0x1a   : > { %v205_v16 = vrot.slane %v2158_v12, 4  ;;  %v206_v17 = vrot.slane %v2160_v13, 4  ;;  %356 = vmatpush.msra.mxu0 %v321_v8  ;;  %v332_v49 = vld [vmem:[%s3276_s2 + $0xb8] sm:$0xff]  ;;  %v315_v53 = vld [vmem:[%s3276_s2 + $0x30] sm:$0xff]  ;;  %v314_v3 = vld [vmem:[%s3276_s2 + $0x28] sm:$0xff]  ;;  %s1995_s12 = sshra.s32 %s1518_s11, 4  ;;  %s1996_s12 = int_to_ptr.hbm [resolvable:$true] %s1995_s12 }
  0x1b   : > { %379 = vmatpush.msra.mxu1 %v337_v11  ;;  %v331_v57 = vld [vmem:[%s3276_s2 + $0xb0] sm:$0xff]  ;;  %v330_v4 = vld [vmem:[%s3276_s2 + $0xa8] sm:$0xff]  ;;  %v313_v5 = vld [vmem:[%s3276_s2 + $0x20] sm:$0xff]  ;;  %s1997_s14 = scalar_lea.hbm %s1996_s12, 16  ;;  %p2002_p0 = scmp.lt.s32.totalorder %s1996_s12, %s3278_s4 }
  0x1c   : > { %v2177_v20 = vsel %vm204_vm0, %v205_v16, %v206_v17  ;;  %v2180_v21 = vsel %vm204_vm0, 0.0, %v205_v16  ;;  %v2183_v22 = vsel %vm204_vm0, %v206_v17, 0.0  ;;  %357 = vmatpush.msra.mxu0 %v320_v14  ;;  %v329_v6 = vld [vmem:[%s3276_s2 + $0xa0] sm:$0xff]  ;;  %v344_v7 = vld [vmem:[%s3276_s2 + $0x118] sm:$0xff]  ;;  %v343_v10 = vld [vmem:[%s3276_s2 + $0x110] sm:$0xff]  ;;  %p1998_p11 = scmp.ne.s32.totalorder %s1996_s12, %s1997_s14 }
  0x1d   : > { %380 = vmatpush.msra.mxu1 %v336_v15  ;;  %v240_v23 = vrot.slane %v2180_v21, 3  ;;  %v241_v24 = vrot.slane %v2177_v20, 3  ;;  %v283_v25 = vrot.slane %v2180_v21, 7  ;;  %v284_v26 = vrot.slane %v2177_v20, 7  ;;  %411 = vmatpush.msra.mxu2 %v344_v7  ;;  %v312_v8 = vld [vmem:[%s3276_s2 + $0x18] sm:$0xff]  ;;  %v342_v11 = vld [vmem:[%s3276_s2 + $0x108] sm:$0xff] }
  0x1e   : > { %v216_v29 = vrot.slane %v2180_v21, 1  ;;  %v217_v30 = vrot.slane %v2177_v20, 1  ;;  %v259_v31 = vrot.slane %v2180_v21, 5  ;;  %v260_v32 = vrot.slane %v2177_v20, 5  ;;  %358 = vmatpush.msra.mxu0 %v319_v18  ;;  %v328_v9 = vld [vmem:[%s3276_s2 + $0x98] sm:$0xff]  ;;  %v311_v14 = vld [vmem:[%s3276_s2 + $0x10] sm:$0xff]  ;;  %p1999_p12 = pnand %p1998_p11, %p2113_p5 }
  0x1f   : > { %381 = vmatpush.msra.mxu1 %v335_v19  ;;  %v242_v33 = vsel %vm239_vm1, %v240_v23, %v241_v24  ;;  %v285_v34 = vsel %vm282_vm2, %v283_v25, %v284_v26  ;;  %v219_v35 = vrot.slane %v2183_v22, 1  ;;  %v262_v36 = vrot.slane %v2183_v22, 5  ;;  %412 = vmatpush.msra.mxu2 %v343_v10  ;;  %v327_v15 = vld [vmem:[%s3276_s2 + $0x90] sm:$0xff]  ;;  %v310_v16 = vld [vmem:[%s3276_s2 + $0x8] sm:$0xff]  ;;  %v341_v18 = vld [vmem:[%s3276_s2 + $0x100] sm:$0xff] }
  0x20   : > { %v1845_v38 = vpack.i.bf16 %v285_v34, %v242_v33  ;;  %v218_v39 = vsel %vm215_vm3, %v216_v29, %v217_v30  ;;  %v261_v40 = vsel %vm258_vm4, %v259_v31, %v260_v32  ;;  %v228_v41 = vrot.slane %v2180_v21, 2  ;;  %359 = vmatpush.msra.mxu0 %v318_v27  ;;  %v326_v17 = vld [vmem:[%s3276_s2 + $0x88] sm:$0xff]  ;;  %v309_v19 = vld [vmem:[%s3276_s2] sm:$0xff]  ;;  %p2000_p13 = pneg %p1999_p12 }
  0x21   : > { %382 = vmatpush.msra.mxu1 %v334_v28  ;;  %v1835_v43 = vpack.i.bf16 %v261_v40, %v218_v39  ;;  %v229_v44 = vrot.slane %v2177_v20, 2  ;;  %v271_v46 = vrot.slane %v2180_v21, 6  ;;  %v272_v47 = vrot.slane %v2177_v20, 6  ;;  %413 = vmatpush.msra.mxu2 %v342_v11  ;;  %v325_v23 = vld [vmem:[%s3276_s2 + $0x80] sm:$0xff] }
  0x22   : > { %1846 = vrot.lane.b32.xlu1 %v1845_v38, %s2045_s10  ;;  %v231_v48 = vrot.slane %v2183_v22, 2  ;;  %360 = vmatpush.msra.mxu0 %v317_v37  ;;  %v220_v50 = vsel %vm215_vm3, %v217_v30, %v219_v35  ;;  %v263_v51 = vsel %vm258_vm4, %v260_v32, %v262_v36  ;;  %v274_v52 = vrot.slane %v2183_v22, 6 }
  0x23   : > { %1836 = vrot.lane.b32.xlu0 %v1835_v43, %s2046_s13  ;;  %383 = vmatpush.msra.mxu1 %v333_v42  ;;  %v230_v54 = vsel %vm227_vm5, %v228_v41, %v229_v44  ;;  %v273_v55 = vsel %vm270_vm6, %v271_v46, %v272_v47  ;;  %v243_v59 = vrot.slane %v2183_v22, 3  ;;  %v286_v60 = vrot.slane %v2183_v22, 7 }
  0x24   : > { %v232_v56 = vsel %vm227_vm5, %v229_v44, %v231_v48  ;;  %361 = vmatpush.msra.mxu0 %v316_v45  ;;  %v275_v58 = vsel %vm270_vm6, %v272_v47, %v274_v52  ;;  %v1850_v61 = vpack.i.bf16 %v263_v51, %v220_v50  ;;  %v1840_v63 = vpack.i.bf16 %v273_v55, %v230_v54 }
  0x25   : > { %384 = vmatpush.msra.mxu1 %v332_v49  ;;  %v1855_v62 = vpack.i.bf16 %v275_v58, %v232_v56  ;;  %v244_v0 = vsel %vm239_vm1, %v241_v24, %v243_v59  ;;  %v287_v1 = vsel %vm282_vm2, %v284_v26, %v286_v60  ;;  %414 = vmatpush.msra.mxu2 %v341_v18  ;;  %v251_v27 = vrot.slane %v2180_v21, 4  ;;  %v1622_v58 = vld [vmem:[%s3276_s2 + $0x228] sm:$0xff]  ;;  %v1621_v59 = vld [vmem:[%s3276_s2 + $0x220] sm:$0xff] }
  0x26   : > { %362 = vmatpush.msra.mxu0 %v315_v53  ;;  %v1860_v2 = vpack.i.bf16 %v287_v1, %v244_v0  ;;  %1587 = vmatmul.msk.f32.vlgmr.msra.gmra.mxu2 %vm294_vm7, %v2177_v20  ;;  %v252_v28 = vrot.slane %v2177_v20, 4  ;;  %v254_v33 = vrot.slane %v2183_v22, 4  ;;  %v1975_v60 = vld [vmem:[%s3277_s3] ss:$0 sm:$0xff]  ;;  %v1604_v1 = vld [vmem:[%s3276_s2 + $0x198] sm:$0xff] }
  0x27   : > { %385 = vmatpush.msra.mxu1 %v331_v57  ;;  %1856 = vrot.lane.b32.xlu2 %v1855_v62, %s2047_s28  ;;  %v1624_v57 = vld [vmem:[%s3276_s2 + $0x238] sm:$0xff] }
  0x28   : > { %363 = vmatpush.msra.mxu0 %v314_v3  ;;  %v253_v32 = vsel %vm204_vm0, %v251_v27, %v252_v28  ;;  %567 = vmatpush.msra.mxu3 %v1604_v1  ;;  %v1615_v1 = vld [vmem:[%s3276_s2 + $0x1f0] sm:$0xff] }
  0x29   : > { %386 = vmatpush.msra.mxu1 %v330_v4 }
  0x2a   : > { %1851 = vrot.lane.b32.xlu1 %v1850_v61, %s2046_s13  ;;  %364 = vmatpush.msra.mxu0 %v313_v5 }
  0x2b   : > { %1841 = vrot.lane.b32.xlu0 %v1840_v63, %s2047_s28  ;;  %387 = vmatpush.msra.mxu1 %v329_v6 }
  0x2c   : > { %365 = vmatpush.msra.mxu0 %v312_v8 }
  0x2d   : > { %388 = vmatpush.msra.mxu1 %v328_v9 }
  0x2e   : > { %366 = vmatpush.msra.mxu0 %v311_v14  ;;  %1588 = vmatmul.msk.f32.gmra.mxu2 %vm294_vm7, %v2183_v22  ;;  %v255_v22 = vsel %vm204_vm0, %v252_v28, %v254_v33 }
  0x2f   : > { %1861 = vrot.lane.b32.xlu2 %v1860_v2, %s2045_s10  ;;  %389 = vmatpush.msra.mxu1 %v327_v15  ;;  %v1620_v2 = vld [vmem:[%s3276_s2 + $0x218] sm:$0xff] }
  0x30   : > { %367 = vmatpush.msra.mxu0 %v310_v16  ;;  %590 = vmatpush.msrb.mxu2 %v1620_v2  ;;  %v1598_v2 = vld [vmem:[%s3276_s2 + $0x168] sm:$0xff] }
  0x31   : > { %390 = vmatpush.msra.mxu1 %v326_v17 }
  0x32   : > { %368 = vmatpush.msra.mxu0 %v309_v19 }
  0x33   : > { %391 = vmatpush.msra.mxu1 %v325_v23 }
  0x34   : > { %625 = vmatpush.msrb.mxu0 %v1624_v57  ;;  %v1603_v57 = vld [vmem:[%s3276_s2 + $0x190] sm:$0xff] }
  0x35   : > { %568 = vmatpush.msra.mxu3 %v1603_v57 }
  0x81   : > { %v1857_v26 = vpop.permute.xlu2 %1856 }
  0x82   : > { %v1859_v47 = vunpack.i.h.bf16 %v1857_v26  ;;  %v1858_v48 = vunpack.i.l.bf16 %v1857_v26 }
  0x89   : > { %v1862_v49 = vpop.permute.xlu2 %1861 }
  0x8a   : > { %v1864_v51 = vunpack.i.h.bf16 %v1862_v49  ;;  %v1863_v52 = vunpack.i.l.bf16 %v1862_v49 }
  0x94   : > { %v1847_v24 = vpop.permute.xlu1 %1846 }
  0x95   : > { %v1837_v25 = vpop.permute.xlu0 %1836  ;;  %v1849_v35 = vunpack.i.h.bf16 %v1847_v24  ;;  %v1848_v36 = vunpack.i.l.bf16 %v1847_v24 }
  0x96   : > { %v1839_v29 = vunpack.i.h.bf16 %v1837_v25  ;;  %v1838_v30 = vunpack.i.l.bf16 %v1837_v25 }
  0x98   : > { %v295_v41 = vsel %vm294_vm7, %v2180_v21, %v1838_v30  ;;  %v303_v42 = vsel %vm294_vm7, %v253_v32, %v1839_v29 }
  0x9c   : > { %v1852_v31 = vpop.permute.xlu1 %1851 }
  0x9d   : > { %v1842_v34 = vpop.permute.xlu0 %1841  ;;  %v1854_v39 = vunpack.i.h.bf16 %v1852_v31  ;;  %v1853_v40 = vunpack.i.l.bf16 %v1852_v31 }
  0x9e   : > { %v1844_v37 = vunpack.i.h.bf16 %v1842_v34  ;;  %v1843_v38 = vunpack.i.l.bf16 %v1842_v34 }
  0x9f   : > { %v296_v21 = vsel %vm294_vm7, %v2177_v20, %v1853_v40  ;;  %v304_v50 = vsel %vm294_vm7, %v255_v22, %v1854_v39  ;;  %v1623_v20 = vld [vmem:[%s3276_s2 + $0x230] sm:$0xff] }
  0xa0   : > { %v298_v43 = vsel %vm297_vm8, %v295_v41, %v1843_v38  ;;  %v305_v44 = vsel %vm297_vm8, %v303_v42, %v1844_v37  ;;  %v299_v53 = vsel %vm297_vm8, %v296_v21, %v1858_v48  ;;  %v306_v54 = vsel %vm297_vm8, %v304_v50, %v1859_v47  ;;  %626 = vmatpush.msrb.mxu0 %v1623_v20  ;;  %v1619_v20 = vld [vmem:[%s3276_s2 + $0x210] sm:$0xff] }
  0xa1   : > { %v301_v45 = vsel %vm300_vm9, %v298_v43, %v1848_v36  ;;  %v307_v46 = vsel %vm300_vm9, %v305_v44, %v1849_v35  ;;  %v302_v55 = vsel %vm300_vm9, %v299_v53, %v1863_v52  ;;  %v308_v56 = vsel %vm300_vm9, %v306_v54, %v1864_v51  ;;  %591 = vmatpush.msrb.mxu2 %v1619_v20 }
  0xa2   : > { %369 = vmatmul.f32.vlgmr.msra.gmra.mxu0 %v301_v45  ;;  %392 = vmatmul.f32.vlgmr.msra.gmra.mxu1 %v307_v46 }
  0xa3   : > { %627 = vmatpush.msrb.mxu0 %v1622_v58  ;;  %v1602_v58 = vld [vmem:[%s3276_s2 + $0x188] sm:$0xff] }
  0xa4   : > { %569 = vmatpush.msra.mxu3 %v1602_v58 }
  0xa5   : > { %628 = vmatpush.msrb.mxu0 %v1621_v59  ;;  %v1618_v59 = vld [vmem:[%s3276_s2 + $0x208] sm:$0xff] }
  0xa6   : > { %592 = vmatpush.msrb.mxu2 %v1618_v59 }
  0xa9   : > { %v416_v61 = vpop.f32.mrf.mxu2 }
  0xaa   : > { %372 = vmatmul.f32.gmra.mxu0 %v302_v55  ;;  %395 = vmatmul.f32.gmra.mxu1 %v308_v56 }
  0xb1   : > { %v419_v9 = vpop.f32.mrf.mxu2 }
 0x11f   : > { %v370_v62 = vpop.f32.mrf.mxu0  ;;  %v393_v63 = vpop.f32.mrf.mxu1 }
 0x120   : > { %v371_v0 = vadd.f32 %v1975_v60, %v370_v62  ;;  %v1600_v62 = vld [vmem:[%s3276_s2 + $0x178] sm:$0xff] }
 0x122   : > { %v394_v3 = vadd.f32 %v393_v63, %v371_v0  ;;  %v1616_v63 = vld [vmem:[%s3276_s2 + $0x1f8] sm:$0xff]  ;;  %v1599_v0 = vld [vmem:[%s3276_s2 + $0x170] sm:$0xff] }
 0x124   : > { %v417_v4 = vadd.f32 %v416_v61, %v394_v3  ;;  %v1617_v61 = vld [vmem:[%s3276_s2 + $0x200] sm:$0xff]  ;;  %v1614_v3 = vld [vmem:[%s3276_s2 + $0x1e8] sm:$0xff] }
 0x125   : > { %593 = vmatpush.msrb.mxu2 %v1617_v61  ;;  %v1661_v61 = vld [vmem:[%s3276_s2 + $0x348] sm:$0xff] }
 0x126   : > { %v422_v5 = vmax.f32 %v417_v4, 0.0  ;;  %v1597_v4 = vld [vmem:[%s3276_s2 + $0x160] sm:$0xff] }
 0x127   : > { %v373_v6 = vpop.f32.mrf.mxu0  ;;  %v396_v8 = vpop.f32.mrf.mxu1  ;;  %594 = vmatpush.msrb.mxu2 %v1616_v63  ;;  %v1976_v63 = vld [vmem:[%s3277_s3 + $0x1] ss:$0 sm:$0xff] }
 0x128   : > { %v374_v7 = vadd.f32 %v1975_v60, %v373_v6  ;;  %v426_v10 = vrot.slane %v422_v5, 4  ;;  %v1601_v60 = vld [vmem:[%s3276_s2 + $0x180] sm:$0xff]  ;;  %v1596_v6 = vld [vmem:[%s3276_s2 + $0x158] sm:$0xff] }
 0x129   : > { %570 = vmatpush.msra.mxu3 %v1601_v60  ;;  %595 = vmatpush.msrb.mxu2 %v1615_v1  ;;  %v1613_v5 = vld [vmem:[%s3276_s2 + $0x1e0] sm:$0xff]  ;;  %v1663_v60 = vld [vmem:[%s3276_s2 + $0x358] sm:$0xff] }
 0x12a   : > { %v397_v11 = vadd.f32 %v396_v8, %v374_v7  ;;  %v2338_v15 = vsel %vm204_vm0, 0.0, %v426_v10  ;;  %v1612_v7 = vld [vmem:[%s3276_s2 + $0x1d8] sm:$0xff]  ;;  %v1595_v8 = vld [vmem:[%s3276_s2 + $0x150] sm:$0xff] }
 0x12b   : > { %v458_v18 = vrot.slane %v2338_v15, 3  ;;  %v498_v19 = vrot.slane %v2338_v15, 7  ;;  %v447_v24 = vrot.slane %v2338_v15, 2  ;;  %v487_v25 = vrot.slane %v2338_v15, 6  ;;  %571 = vmatpush.msra.mxu3 %v1600_v62  ;;  %596 = vmatpush.msrb.mxu2 %v1614_v3  ;;  %v1660_v62 = vld [vmem:[%s3276_s2 + $0x340] sm:$0xff] }
 0x12c   : > { %v420_v14 = vadd.f32 %v419_v9, %v397_v11  ;;  %v436_v26 = vrot.slane %v2338_v15, 1  ;;  %v476_v33 = vrot.slane %v2338_v15, 5  ;;  %v1611_v9 = vld [vmem:[%s3276_s2 + $0x1d0] sm:$0xff]  ;;  %v1610_v11 = vld [vmem:[%s3276_s2 + $0x1c8] sm:$0xff] }
 0x12d   : > { %572 = vmatpush.msra.mxu3 %v1599_v0  ;;  %597 = vmatpush.msrb.mxu2 %v1613_v5 }
 0x12e   : > { %v423_v16 = vmax.f32 %v420_v14, 0.0  ;;  %v1593_v14 = vld [vmem:[%s3276_s2 + $0x140] sm:$0xff] }
 0x12f   : > { %573 = vmatpush.msra.mxu3 %v1598_v2  ;;  %598 = vmatpush.msrb.mxu2 %v1612_v7 }
 0x130   : > { %v427_v17 = vrot.slane %v423_v16, 4  ;;  %v1609_v16 = vld [vmem:[%s3276_s2 + $0x1c0] sm:$0xff] }
 0x131   : > { %574 = vmatpush.msra.mxu3 %v1597_v4  ;;  %599 = vmatpush.msrb.mxu2 %v1611_v9 }
 0x132   : > { %v2343_v23 = vsel %vm204_vm0, %v426_v10, %v427_v17  ;;  %v2355_v31 = vsel %vm204_vm0, %v427_v17, 0.0  ;;  %v1594_v10 = vld [vmem:[%s3276_s2 + $0x148] sm:$0xff]  ;;  %v1592_v17 = vld [vmem:[%s3276_s2 + $0x138] sm:$0xff] }
 0x133   : > { %1626 = vmatmul.msk.f32.vlgmr.msrb.gmra.mxu0 %vm294_vm7, %v2343_v23  ;;  %v459_v27 = vrot.slane %v2343_v23, 3  ;;  %v499_v28 = vrot.slane %v2343_v23, 7  ;;  %v448_v29 = vrot.slane %v2343_v23, 2  ;;  %v488_v30 = vrot.slane %v2343_v23, 6  ;;  %575 = vmatpush.msra.mxu3 %v1596_v6 }
 0x134   : > { %v437_v32 = vrot.slane %v2343_v23, 1  ;;  %v477_v34 = vrot.slane %v2343_v23, 5  ;;  %v461_v44 = vrot.slane %v2355_v31, 3  ;;  %v501_v22 = vrot.slane %v2355_v31, 7  ;;  %600 = vmatpush.msrb.mxu2 %v1610_v11 }
 0x135   : > { %v460_v35 = vsel %vm239_vm1, %v458_v18, %v459_v27  ;;  %v500_v36 = vsel %vm282_vm2, %v498_v19, %v499_v28  ;;  %v449_v37 = vsel %vm227_vm5, %v447_v24, %v448_v29  ;;  %v489_v38 = vsel %vm270_vm6, %v487_v25, %v488_v30  ;;  %576 = vmatpush.msra.mxu3 %v1595_v8  ;;  %v1608_v18 = vld [vmem:[%s3276_s2 + $0x1b8] sm:$0xff]  ;;  %v1591_v19 = vld [vmem:[%s3276_s2 + $0x130] sm:$0xff]  ;;  %v1590_v25 = vld [vmem:[%s3276_s2 + $0x128] sm:$0xff] }
 0x136   : > { %v1875_v39 = vpack.i.bf16 %v500_v36, %v460_v35  ;;  %v1870_v40 = vpack.i.bf16 %v489_v38, %v449_v37  ;;  %v438_v41 = vsel %vm215_vm3, %v436_v26, %v437_v32  ;;  %v478_v42 = vsel %vm258_vm4, %v476_v33, %v477_v34  ;;  %601 = vmatpush.msrb.mxu2 %v1609_v16  ;;  %v1607_v24 = vld [vmem:[%s3276_s2 + $0x1b0] sm:$0xff]  ;;  %v1606_v26 = vld [vmem:[%s3276_s2 + $0x1a8] sm:$0xff]  ;;  %v1643_v16 = vld [vmem:[%s3276_s2 + $0x2b8] sm:$0xff] }
 0x137   : > { %v1865_v43 = vpack.i.bf16 %v478_v42, %v438_v41  ;;  %v450_v45 = vrot.slane %v2355_v31, 2  ;;  %v490_v46 = vrot.slane %v2355_v31, 6  ;;  %v439_v47 = vrot.slane %v2355_v31, 1  ;;  %577 = vmatpush.msra.mxu3 %v1594_v10  ;;  %783 = vmatpush.msrb.mxu1 %v1643_v16  ;;  %v1633_v16 = vld [vmem:[%s3276_s2 + $0x268] sm:$0xff] }
 0x138   : > { %1876 = vrot.lane.b32.xlu2 %v1875_v39, %s2045_s10  ;;  %1871 = vrot.lane.b32.xlu1 %v1870_v40, %s2047_s28  ;;  %v479_v48 = vrot.slane %v2355_v31, 5  ;;  %v462_v49 = vsel %vm239_vm1, %v459_v27, %v461_v44  ;;  %v502_v21 = vsel %vm282_vm2, %v499_v28, %v501_v22  ;;  %v1589_v27 = vld [vmem:[%s3276_s2 + $0x120] sm:$0xff]  ;;  %v469_v36 = vrot.slane %v2338_v15, 4 }
 0x139   : > { %1866 = vrot.lane.b32.xlu0 %v1865_v43, %s2046_s13  ;;  %v451_v50 = vsel %vm227_vm5, %v448_v29, %v450_v45  ;;  %v491_v51 = vsel %vm270_vm6, %v488_v30, %v490_v46  ;;  %v440_v52 = vsel %vm215_vm3, %v437_v32, %v439_v47  ;;  %v1890_v54 = vpack.i.bf16 %v502_v21, %v462_v49  ;;  %v1605_v28 = vld [vmem:[%s3276_s2 + $0x1a0] sm:$0xff] }
 0x13a   : > { %v480_v53 = vsel %vm258_vm4, %v477_v34, %v479_v48  ;;  %v1885_v55 = vpack.i.bf16 %v491_v51, %v451_v50  ;;  %578 = vmatpush.msra.mxu3 %v1593_v14  ;;  %602 = vmatpush.msrb.mxu2 %v1608_v18  ;;  %v470_v30 = vrot.slane %v2343_v23, 4  ;;  %v472_v47 = vrot.slane %v2355_v31, 4 }
 0x13b   : > { %1627 = vmatmul.msk.f32.gmra.mxu0 %vm294_vm7, %v2355_v31  ;;  %v1880_v56 = vpack.i.bf16 %v480_v53, %v440_v52 }
 0x13c   : > { %579 = vmatpush.msra.mxu3 %v1592_v17  ;;  %603 = vmatpush.msrb.mxu2 %v1607_v24  ;;  %v471_v39 = vsel %vm204_vm0, %v469_v36, %v470_v30  ;;  %v473_v53 = vsel %vm204_vm0, %v470_v30, %v472_v47  ;;  %v1659_v17 = vld [vmem:[%s3276_s2 + $0x338] sm:$0xff] }
 0x13e   : > { %580 = vmatpush.msra.mxu3 %v1591_v19  ;;  %604 = vmatpush.msrb.mxu2 %v1606_v26 }
 0x140   : > { %1891 = vrot.lane.b32.xlu2 %v1890_v54, %s2045_s10  ;;  %1886 = vrot.lane.b32.xlu1 %v1885_v55, %s2047_s28 }
 0x141   : > { %1881 = vrot.lane.b32.xlu0 %v1880_v56, %s2046_s13  ;;  %581 = vmatpush.msra.mxu3 %v1590_v25 }
 0x142   : > { %605 = vmatpush.msrb.mxu2 %v1605_v28 }
 0x143   : > { %582 = vmatpush.msra.mxu3 %v1589_v27 }
 0x144   : > { %841 = vmatpush.msra.mxu2 %v1663_v60  ;;  %v1658_v60 = vld [vmem:[%s3276_s2 + $0x330] sm:$0xff] }
 0x145   : > { %806 = vmatpush.msrb.mxu3 %v1659_v17  ;;  %v1649_v17 = vld [vmem:[%s3276_s2 + $0x2e8] sm:$0xff] }
 0x147   : > { %807 = vmatpush.msrb.mxu3 %v1658_v60 }
 0x192   : > { %v1877_v29 = vpop.permute.xlu2 %1876 }
 0x193   : > { %v1879_v40 = vunpack.i.h.bf16 %v1877_v29  ;;  %v1878_v41 = vunpack.i.l.bf16 %v1877_v29 }
 0x19a   : > { %v1892_v49 = vpop.permute.xlu2 %1891 }
 0x19b   : > { %v1894_v54 = vunpack.i.h.bf16 %v1892_v49  ;;  %v1893_v55 = vunpack.i.l.bf16 %v1892_v49 }
 0x1aa   : > { %v1872_v32 = vpop.permute.xlu1 %1871 }
 0x1ab   : > { %v1874_v33 = vunpack.i.h.bf16 %v1872_v32  ;;  %v1873_v34 = vunpack.i.l.bf16 %v1872_v32  ;;  %v1867_v35 = vpop.permute.xlu0 %1866 }
 0x1ac   : > { %v1869_v37 = vunpack.i.h.bf16 %v1867_v35  ;;  %v1868_v38 = vunpack.i.l.bf16 %v1867_v35 }
 0x1ae   : > { %v509_v42 = vsel %vm294_vm7, %v2338_v15, %v1868_v38  ;;  %v515_v43 = vsel %vm294_vm7, %v471_v39, %v1869_v37 }
 0x1af   : > { %v511_v44 = vsel %vm297_vm8, %v509_v42, %v1873_v34  ;;  %v517_v22 = vsel %vm297_vm8, %v515_v43, %v1874_v33 }
 0x1b0   : > { %v513_v45 = vsel %vm300_vm9, %v511_v44, %v1878_v41  ;;  %v519_v46 = vsel %vm300_vm9, %v517_v22, %v1879_v40  ;;  %v630_v3 = vpop.f32.mrf.mxu0 }
 0x1b1   : > { %583 = vmatmul.f32.vlgmr.msra.gmra.mxu3 %v513_v45  ;;  %606 = vmatmul.f32.vlgmr.msrb.gmra.mxu2 %v519_v46 }
 0x1b2   : > { %v1887_v48 = vpop.permute.xlu1 %1886 }
 0x1b3   : > { %v1889_v21 = vunpack.i.h.bf16 %v1887_v48  ;;  %v1888_v50 = vunpack.i.l.bf16 %v1887_v48  ;;  %v1882_v51 = vpop.permute.xlu0 %1881 }
 0x1b4   : > { %v1884_v15 = vunpack.i.h.bf16 %v1882_v51  ;;  %v1883_v52 = vunpack.i.l.bf16 %v1882_v51 }
 0x1b6   : > { %v510_v56 = vsel %vm294_vm7, %v2343_v23, %v1883_v52  ;;  %v516_v57 = vsel %vm294_vm7, %v473_v53, %v1884_v15  ;;  %v1662_v23 = vld [vmem:[%s3276_s2 + $0x350] sm:$0xff] }
 0x1b7   : > { %v512_v20 = vsel %vm297_vm8, %v510_v56, %v1888_v50  ;;  %v518_v31 = vsel %vm297_vm8, %v516_v57, %v1889_v21  ;;  %842 = vmatpush.msra.mxu2 %v1662_v23  ;;  %v1641_v23 = vld [vmem:[%s3276_s2 + $0x2a8] sm:$0xff] }
 0x1b8   : > { %v514_v58 = vsel %vm300_vm9, %v512_v20, %v1893_v55  ;;  %v520_v59 = vsel %vm300_vm9, %v518_v31, %v1894_v54  ;;  %v633_v14 = vpop.f32.mrf.mxu0 }
 0x1b9   : > { %586 = vmatmul.f32.gmra.mxu3 %v514_v58  ;;  %609 = vmatmul.f32.gmra.mxu2 %v520_v59  ;;  %v1642_v59 = vld [vmem:[%s3276_s2 + $0x2b0] sm:$0xff] }
 0x1ba   : > { %843 = vmatpush.msra.mxu2 %v1661_v61  ;;  %784 = vmatpush.msrb.mxu1 %v1642_v59  ;;  %v1657_v61 = vld [vmem:[%s3276_s2 + $0x328] sm:$0xff] }
 0x1bb   : > { %808 = vmatpush.msrb.mxu3 %v1657_v61  ;;  %v1702_v61 = vld [vmem:[%s3276_s2 + $0x478] sm:$0xff] }
 0x1bc   : > { %844 = vmatpush.msra.mxu2 %v1660_v62  ;;  %v1640_v62 = vld [vmem:[%s3276_s2 + $0x2a0] sm:$0xff]  ;;  %785 = vmatpush.msrb.mxu1 %v1641_v23 }
 0x1be   : > { %786 = vmatpush.msrb.mxu1 %v1640_v62  ;;  %v1701_v62 = vld [vmem:[%s3276_s2 + $0x470] sm:$0xff] }
 0x234   : > { %v584_v0 = vpop.f32.mrf.mxu3  ;;  %v607_v1 = vpop.f32.mrf.mxu2 }
 0x235   : > { %v585_v2 = vadd.f32 %v1976_v63, %v584_v0  ;;  %v1639_v0 = vld [vmem:[%s3276_s2 + $0x298] sm:$0xff] }
 0x236   : > { %787 = vmatpush.msrb.mxu1 %v1639_v0  ;;  %v1977_v0 = vld [vmem:[%s3277_s3 + $0x2] ss:$0 sm:$0xff] }
 0x237   : > { %v608_v4 = vadd.f32 %v607_v1, %v585_v2  ;;  %v1655_v1 = vld [vmem:[%s3276_s2 + $0x318] sm:$0xff]  ;;  %v1638_v2 = vld [vmem:[%s3276_s2 + $0x290] sm:$0xff] }
 0x238   : > { %788 = vmatpush.msrb.mxu1 %v1638_v2 }
 0x239   : > { %v631_v5 = vadd.f32 %v630_v3, %v608_v4  ;;  %v1654_v3 = vld [vmem:[%s3276_s2 + $0x310] sm:$0xff]  ;;  %v1637_v4 = vld [vmem:[%s3276_s2 + $0x288] sm:$0xff] }
 0x23a   : > { %789 = vmatpush.msrb.mxu1 %v1637_v4 }
 0x23b   : > { %v636_v6 = vmax.f32 %v631_v5, 0.0  ;;  %v1653_v5 = vld [vmem:[%s3276_s2 + $0x308] sm:$0xff] }
 0x23c   : > { %v587_v7 = vpop.f32.mrf.mxu3  ;;  %v610_v10 = vpop.f32.mrf.mxu2 }
 0x23d   : > { %v2511_v8 = vadd.f32 %v636_v6, %v2158_v12  ;;  %v588_v9 = vadd.f32 %v1976_v63, %v587_v7  ;;  %v1656_v63 = vld [vmem:[%s3276_s2 + $0x320] sm:$0xff] }
 0x23e   : > { %809 = vmatpush.msrb.mxu3 %v1656_v63  ;;  %v1636_v6 = vld [vmem:[%s3276_s2 + $0x280] sm:$0xff] }
 0x23f   : > { %v611_v11 = vadd.f32 %v610_v10, %v588_v9  ;;  %v642_v18 = vrot.slane %v2511_v8, 4  ;;  %v1652_v7 = vld [vmem:[%s3276_s2 + $0x300] sm:$0xff]  ;;  %v1635_v9 = vld [vmem:[%s3276_s2 + $0x278] sm:$0xff]  ;;  %790 = vmatpush.msrb.mxu1 %v1636_v6 }
 0x240   : > { %810 = vmatpush.msrb.mxu3 %v1655_v1  ;;  %v1651_v10 = vld [vmem:[%s3276_s2 + $0x2f8] sm:$0xff]  ;;  %v1699_v63 = vld [vmem:[%s3276_s2 + $0x460] sm:$0xff] }
 0x241   : > { %v634_v19 = vadd.f32 %v633_v14, %v611_v11  ;;  %v2521_v12 = vsel %vm204_vm0, 0.0, %v642_v18  ;;  %v1634_v11 = vld [vmem:[%s3276_s2 + $0x270] sm:$0xff]  ;;  %791 = vmatpush.msrb.mxu1 %v1635_v9 }
 0x242   : > { %v674_v27 = vrot.slane %v2521_v12, 3  ;;  %v714_v28 = vrot.slane %v2521_v12, 7  ;;  %v663_v30 = vrot.slane %v2521_v12, 2  ;;  %v703_v32 = vrot.slane %v2521_v12, 6  ;;  %811 = vmatpush.msrb.mxu3 %v1654_v3  ;;  %v1650_v14 = vld [vmem:[%s3276_s2 + $0x2f0] sm:$0xff] }
 0x243   : > { %v637_v24 = vmax.f32 %v634_v19, 0.0  ;;  %v652_v33 = vrot.slane %v2521_v12, 1  ;;  %v692_v39 = vrot.slane %v2521_v12, 5  ;;  %792 = vmatpush.msrb.mxu1 %v1634_v11  ;;  %v1648_v19 = vld [vmem:[%s3276_s2 + $0x2e0] sm:$0xff] }
 0x244   : > { %812 = vmatpush.msrb.mxu3 %v1653_v5 }
 0x245   : > { %v2524_v25 = vadd.f32 %v637_v24, %v2160_v13  ;;  %793 = vmatpush.msrb.mxu1 %v1633_v16  ;;  %v1631_v24 = vld [vmem:[%s3276_s2 + $0x258] sm:$0xff] }
 0x246   : > { %813 = vmatpush.msrb.mxu3 %v1652_v7  ;;  %v1698_v16 = vld [vmem:[%s3276_s2 + $0x458] sm:$0xff] }
 0x247   : > { %v643_v26 = vrot.slane %v2524_v25, 4  ;;  %1020 = vmatpush.msrb.mxu2 %v1698_v16  ;;  %v1689_v16 = vld [vmem:[%s3276_s2 + $0x410] sm:$0xff] }
 0x248   : > { %814 = vmatpush.msrb.mxu3 %v1651_v10 }
 0x249   : > { %v2530_v29 = vsel %vm204_vm0, %v642_v18, %v643_v26  ;;  %v2542_v37 = vsel %vm204_vm0, %v643_v26, 0.0  ;;  %v1632_v18 = vld [vmem:[%s3276_s2 + $0x260] sm:$0xff]  ;;  %v1647_v26 = vld [vmem:[%s3276_s2 + $0x2d8] sm:$0xff] }
 0x24a   : > { %1665 = vmatmul.msk.f32.vlgmr.msra.gmra.mxu2 %vm294_vm7, %v2530_v29  ;;  %v675_v13 = vrot.slane %v2530_v29, 3  ;;  %v715_v34 = vrot.slane %v2530_v29, 7  ;;  %v664_v35 = vrot.slane %v2530_v29, 2  ;;  %v704_v36 = vrot.slane %v2530_v29, 6  ;;  %815 = vmatpush.msrb.mxu3 %v1650_v14  ;;  %v1682_v14 = vld [vmem:[%s3276_s2 + $0x3d8] sm:$0xff] }
 0x24b   : > { %v653_v38 = vrot.slane %v2530_v29, 1  ;;  %v693_v40 = vrot.slane %v2530_v29, 5  ;;  %v666_v49 = vrot.slane %v2542_v37, 2  ;;  %v706_v21 = vrot.slane %v2542_v37, 6  ;;  %794 = vmatpush.msrb.mxu1 %v1632_v18  ;;  %997 = vmatpush.msra.mxu0 %v1682_v14  ;;  %v1673_v14 = vld [vmem:[%s3276_s2 + $0x390] sm:$0xff] }
 0x24c   : > { %v676_v41 = vsel %vm239_vm1, %v674_v27, %v675_v13  ;;  %v716_v42 = vsel %vm282_vm2, %v714_v28, %v715_v34  ;;  %v665_v43 = vsel %vm227_vm5, %v663_v30, %v664_v35  ;;  %v705_v44 = vsel %vm270_vm6, %v703_v32, %v704_v36  ;;  %816 = vmatpush.msrb.mxu3 %v1649_v17  ;;  %v1630_v27 = vld [vmem:[%s3276_s2 + $0x250] sm:$0xff]  ;;  %v1629_v30 = vld [vmem:[%s3276_s2 + $0x248] sm:$0xff] }
 0x24d   : > { %v1905_v22 = vpack.i.bf16 %v676_v41, %v716_v42  ;;  %v1900_v45 = vpack.i.bf16 %v665_v43, %v705_v44  ;;  %v654_v46 = vsel %vm215_vm3, %v652_v33, %v653_v38  ;;  %v694_v47 = vsel %vm258_vm4, %v692_v39, %v693_v40  ;;  %795 = vmatpush.msrb.mxu1 %v1631_v24  ;;  %v1646_v28 = vld [vmem:[%s3276_s2 + $0x2d0] sm:$0xff]  ;;  %v1645_v32 = vld [vmem:[%s3276_s2 + $0x2c8] sm:$0xff]  ;;  %v1628_v33 = vld [vmem:[%s3276_s2 + $0x240] sm:$0xff] }
 0x24e   : > { %v1895_v48 = vpack.i.bf16 %v654_v46, %v694_v47  ;;  %v655_v50 = vrot.slane %v2542_v37, 1  ;;  %v695_v51 = vrot.slane %v2542_v37, 5  ;;  %v717_v15 = vrot.slane %v2542_v37, 7  ;;  %817 = vmatpush.msrb.mxu3 %v1648_v19 }
 0x24f   : > { %1906 = vrot.lane.b32.xlu2 %v1905_v22, %s2045_s10  ;;  %1901 = vrot.lane.b32.xlu1 %v1900_v45, %s2047_s28  ;;  %v667_v52 = vsel %vm227_vm5, %v664_v35, %v666_v49  ;;  %v707_v53 = vsel %vm270_vm6, %v704_v36, %v706_v21  ;;  %v677_v31 = vrot.slane %v2542_v37, 3  ;;  %v685_v41 = vrot.slane %v2521_v12, 4 }
 0x250   : > { %1896 = vrot.lane.b32.xlu0 %v1895_v48, %s2046_s13  ;;  %v656_v54 = vsel %vm215_vm3, %v653_v38, %v655_v50  ;;  %v696_v55 = vsel %vm258_vm4, %v693_v40, %v695_v51  ;;  %v1915_v56 = vpack.i.bf16 %v667_v52, %v707_v53  ;;  %v718_v57 = vsel %vm282_vm2, %v715_v34, %v717_v15 }
 0x251   : > { %v1910_v20 = vpack.i.bf16 %v656_v54, %v696_v55  ;;  %v678_v58 = vsel %vm239_vm1, %v675_v13, %v677_v31  ;;  %818 = vmatpush.msrb.mxu3 %v1647_v26  ;;  %796 = vmatpush.msrb.mxu1 %v1630_v27  ;;  %v1644_v13 = vld [vmem:[%s3276_s2 + $0x2c0] sm:$0xff]  ;;  %v686_v34 = vrot.slane %v2530_v29, 4  ;;  %v688_v51 = vrot.slane %v2542_v37, 4 }
 0x252   : > { %1666 = vmatmul.msk.f32.gmra.mxu2 %vm294_vm7, %v2542_v37 }
 0x253   : > { %819 = vmatpush.msrb.mxu3 %v1646_v28  ;;  %797 = vmatpush.msrb.mxu1 %v1629_v30  ;;  %v687_v44 = vsel %vm204_vm0, %v685_v41, %v686_v34 }
 0x255   : > { %820 = vmatpush.msrb.mxu3 %v1645_v32  ;;  %798 = vmatpush.msrb.mxu1 %v1628_v33 }
 0x257   : > { %721 = vrot.lane.b32.xlu2 %v718_v57, %s2045_s10  ;;  %1916 = vrot.lane.b32.xlu1 %v1915_v56, %s2047_s28 }
 0x258   : > { %1911 = vrot.lane.b32.xlu0 %v1910_v20, %s2046_s13  ;;  %821 = vmatpush.msrb.mxu3 %v1644_v13 }
 0x259   : > { %1055 = vmatpush.msra.mxu1 %v1702_v61  ;;  %v1697_v61 = vld [vmem:[%s3276_s2 + $0x450] sm:$0xff] }
 0x25a   : > { %1021 = vmatpush.msrb.mxu2 %v1697_v61 }
 0x25b   : > { %1056 = vmatpush.msra.mxu1 %v1701_v62  ;;  %v1680_v62 = vld [vmem:[%s3276_s2 + $0x3c8] sm:$0xff] }
 0x260   : > { %681 = vrot.lane.b32.xlu0 %v678_v58, %s2045_s10 }
 0x2a9   : > { %v1907_v36 = vpop.permute.xlu2 %1906 }
 0x2aa   : > { %v1909_v22 = vunpack.i.h.bf16 %v1907_v36  ;;  %v1908_v45 = vunpack.i.l.bf16 %v1907_v36 }
 0x2b1   : > { %v722_v57 = vpop.permute.xlu2 %721 }
 0x2c1   : > { %v1902_v35 = vpop.permute.xlu1 %1901 }
 0x2c2   : > { %v1904_v38 = vunpack.i.h.bf16 %v1902_v35  ;;  %v1903_v39 = vunpack.i.l.bf16 %v1902_v35  ;;  %v1897_v40 = vpop.permute.xlu0 %1896 }
 0x2c3   : > { %v1899_v42 = vunpack.i.h.bf16 %v1897_v40  ;;  %v1898_v43 = vunpack.i.l.bf16 %v1897_v40 }
 0x2c5   : > { %v725_v46 = vsel %vm294_vm7, %v2521_v12, %v1899_v42  ;;  %v731_v47 = vsel %vm294_vm7, %v687_v44, %v1898_v43  ;;  %v689_v12 = vsel %vm204_vm0, %v686_v34, %v688_v51 }
 0x2c6   : > { %v727_v48 = vsel %vm297_vm8, %v725_v46, %v1904_v38  ;;  %v733_v49 = vsel %vm297_vm8, %v731_v47, %v1903_v39 }
 0x2c7   : > { %v729_v21 = vsel %vm300_vm9, %v727_v48, %v1909_v22  ;;  %v735_v50 = vsel %vm300_vm9, %v733_v49, %v1908_v45 }
 0x2c8   : > { %799 = vmatmul.f32.vlgmr.msrb.gmra.mxu1 %v729_v21  ;;  %822 = vmatmul.f32.vlgmr.msrb.gmra.mxu3 %v735_v50 }
 0x2c9   : > { %v1917_v15 = vpop.permute.xlu1 %1916 }
 0x2ca   : > { %v1918_v52 = vunpack.i.l.bf16 %v1917_v15  ;;  %v1912_v53 = vpop.permute.xlu0 %1911  ;;  %v1919_v20 = vunpack.i.h.bf16 %v1917_v15 }
 0x2cb   : > { %v1914_v54 = vunpack.i.h.bf16 %v1912_v53  ;;  %v1913_v55 = vunpack.i.l.bf16 %v1912_v53 }
 0x2cd   : > { %v732_v56 = vsel %vm294_vm7, %v689_v12, %v1913_v55  ;;  %v726_v59 = vsel %vm294_vm7, %v2530_v29, %v1914_v54  ;;  %v1700_v29 = vld [vmem:[%s3276_s2 + $0x468] sm:$0xff]  ;;  %v846_v3 = vpop.f32.mrf.mxu2 }
 0x2ce   : > { %v734_v31 = vsel %vm297_vm8, %v732_v56, %v1918_v52  ;;  %v728_v60 = vsel %vm297_vm8, %v726_v59, %v1919_v20  ;;  %1057 = vmatpush.msra.mxu1 %v1700_v29  ;;  %v1696_v29 = vld [vmem:[%s3276_s2 + $0x448] sm:$0xff] }
 0x2cf   : > { %v736_v58 = vsel %vm300_vm9, %v734_v31, %v722_v57  ;;  %1022 = vmatpush.msrb.mxu2 %v1696_v29  ;;  %v1741_v29 = vld [vmem:[%s3276_s2 + $0x598] sm:$0xff] }
 0x2d0   : > { %825 = vmatmul.f32.gmra.mxu3 %v736_v58  ;;  %1058 = vmatpush.msra.mxu1 %v1699_v63  ;;  %v1679_v63 = vld [vmem:[%s3276_s2 + $0x3c0] sm:$0xff] }
 0x2d2   : > { %v682_v37 = vpop.permute.xlu0 %681  ;;  %1271 = vmatpush.msrb.mxu1 %v1741_v29  ;;  %v1736_v29 = vld [vmem:[%s3276_s2 + $0x570] sm:$0xff] }
 0x2d3   : > { %v730_v23 = vsel %vm300_vm9, %v728_v60, %v682_v37 }
 0x2d4   : > { %802 = vmatmul.f32.gmra.mxu1 %v730_v23  ;;  %v1681_v23 = vld [vmem:[%s3276_s2 + $0x3d0] sm:$0xff] }
 0x2d5   : > { %v849_v19 = vpop.f32.mrf.mxu2  ;;  %998 = vmatpush.msra.mxu0 %v1681_v23 }
 0x2d7   : > { %999 = vmatpush.msra.mxu0 %v1680_v62 }
 0x2d9   : > { %1000 = vmatpush.msra.mxu0 %v1679_v63  ;;  %v1740_v63 = vld [vmem:[%s3276_s2 + $0x590] sm:$0xff] }
 0x2da   : > { %1272 = vmatpush.msrb.mxu1 %v1740_v63  ;;  %v1717_v63 = vld [vmem:[%s3276_s2 + $0x4d8] sm:$0xff] }
 0x345   : > { %v800_v1 = vpop.f32.mrf.mxu1 }
 0x346   : > { %v801_v2 = vadd.f32 %v1977_v0, %v800_v1  ;;  %v1678_v1 = vld [vmem:[%s3276_s2 + $0x3b8] sm:$0xff] }
 0x347   : > { %1001 = vmatpush.msra.mxu0 %v1678_v1  ;;  %v1978_v1 = vld [vmem:[%s3277_s3 + $0x3] ss:$0 sm:$0xff] }
 0x34b   : > { %v823_v4 = vpop.f32.mrf.mxu3 }
 0x34c   : > { %v824_v5 = vadd.f32 %v823_v4, %v801_v2  ;;  %v1694_v2 = vld [vmem:[%s3276_s2 + $0x438] sm:$0xff]  ;;  %v1693_v4 = vld [vmem:[%s3276_s2 + $0x430] sm:$0xff] }
 0x34e   : > { %v847_v6 = vadd.f32 %v846_v3, %v824_v5  ;;  %v1677_v3 = vld [vmem:[%s3276_s2 + $0x3b0] sm:$0xff]  ;;  %v1676_v5 = vld [vmem:[%s3276_s2 + $0x3a8] sm:$0xff] }
 0x34f   : > { %1002 = vmatpush.msra.mxu0 %v1677_v3 }
 0x350   : > { %v852_v7 = vmax.f32 %v847_v6, 0.0  ;;  %v1692_v6 = vld [vmem:[%s3276_s2 + $0x428] sm:$0xff] }
 0x351   : > { %v803_v9 = vpop.f32.mrf.mxu1  ;;  %1003 = vmatpush.msra.mxu0 %v1676_v5 }
 0x352   : > { %v804_v10 = vadd.f32 %v1977_v0, %v803_v9  ;;  %v856_v17 = vrot.slane %v852_v7, 4  ;;  %v1695_v0 = vld [vmem:[%s3276_s2 + $0x440] sm:$0xff] }
 0x353   : > { %v826_v11 = vpop.f32.mrf.mxu3  ;;  %1023 = vmatpush.msrb.mxu2 %v1695_v0  ;;  %v1675_v7 = vld [vmem:[%s3276_s2 + $0x3a0] sm:$0xff] }
 0x354   : > { %v827_v18 = vadd.f32 %v826_v11, %v804_v10  ;;  %v2705_v26 = vsel %vm204_vm0, 0.0, %v856_v17  ;;  %v1691_v9 = vld [vmem:[%s3276_s2 + $0x420] sm:$0xff]  ;;  %v1674_v10 = vld [vmem:[%s3276_s2 + $0x398] sm:$0xff]  ;;  %1004 = vmatpush.msra.mxu0 %v1675_v7 }
 0x355   : > { %v888_v30 = vrot.slane %v2705_v26, 3  ;;  %v928_v32 = vrot.slane %v2705_v26, 7  ;;  %v877_v13 = vrot.slane %v2705_v26, 2  ;;  %v917_v34 = vrot.slane %v2705_v26, 6  ;;  %1024 = vmatpush.msrb.mxu2 %v1694_v2  ;;  %v1690_v11 = vld [vmem:[%s3276_s2 + $0x418] sm:$0xff]  ;;  %v1738_v0 = vld [vmem:[%s3276_s2 + $0x580] sm:$0xff] }
 0x356   : > { %v850_v24 = vadd.f32 %v849_v19, %v827_v18  ;;  %v866_v35 = vrot.slane %v2705_v26, 1  ;;  %v906_v43 = vrot.slane %v2705_v26, 5  ;;  %1005 = vmatpush.msra.mxu0 %v1674_v10  ;;  %v1688_v18 = vld [vmem:[%s3276_s2 + $0x408] sm:$0xff]  ;;  %v1671_v19 = vld [vmem:[%s3276_s2 + $0x380] sm:$0xff] }
 0x357   : > { %1025 = vmatpush.msrb.mxu2 %v1693_v4 }
 0x358   : > { %v853_v27 = vmax.f32 %v850_v24, 0.0  ;;  %1006 = vmatpush.msra.mxu0 %v1673_v14  ;;  %v1687_v24 = vld [vmem:[%s3276_s2 + $0x400] sm:$0xff] }
 0x359   : > { %1026 = vmatpush.msrb.mxu2 %v1692_v6 }
 0x35a   : > { %v857_v28 = vrot.slane %v853_v27, 4  ;;  %v1670_v27 = vld [vmem:[%s3276_s2 + $0x378] sm:$0xff] }
 0x35b   : > { %1027 = vmatpush.msrb.mxu2 %v1691_v9 }
 0x35c   : > { %v2710_v33 = vsel %vm204_vm0, %v856_v17, %v857_v28  ;;  %v2722_v41 = vsel %vm204_vm0, %v857_v28, 0.0  ;;  %v1672_v17 = vld [vmem:[%s3276_s2 + $0x388] sm:$0xff]  ;;  %v1686_v28 = vld [vmem:[%s3276_s2 + $0x3f8] sm:$0xff] }
 0x35d   : > { %1704 = vmatmul.msk.f32.vlgmr.msra.gmra.mxu1 %vm294_vm7, %v2710_v33  ;;  %v889_v36 = vrot.slane %v2710_v33, 3  ;;  %v929_v38 = vrot.slane %v2710_v33, 7  ;;  %v878_v39 = vrot.slane %v2710_v33, 2  ;;  %v918_v40 = vrot.slane %v2710_v33, 6  ;;  %1028 = vmatpush.msrb.mxu2 %v1690_v11 }
 0x35e   : > { %v867_v42 = vrot.slane %v2710_v33, 1  ;;  %v907_v44 = vrot.slane %v2710_v33, 5  ;;  %v880_v15 = vrot.slane %v2722_v41, 2  ;;  %v920_v52 = vrot.slane %v2722_v41, 6  ;;  %1007 = vmatpush.msra.mxu0 %v1672_v17 }
 0x35f   : > { %v890_v22 = vsel %vm239_vm1, %v888_v30, %v889_v36  ;;  %v930_v45 = vsel %vm282_vm2, %v928_v32, %v929_v38  ;;  %v879_v46 = vsel %vm227_vm5, %v877_v13, %v878_v39  ;;  %v919_v47 = vsel %vm270_vm6, %v917_v34, %v918_v40  ;;  %1029 = vmatpush.msrb.mxu2 %v1689_v16  ;;  %v1669_v30 = vld [vmem:[%s3276_s2 + $0x370] sm:$0xff]  ;;  %v1668_v13 = vld [vmem:[%s3276_s2 + $0x368] sm:$0xff] }
 0x360   : > { %v1930_v48 = vpack.i.bf16 %v890_v22, %v930_v45  ;;  %v1925_v49 = vpack.i.bf16 %v879_v46, %v919_v47  ;;  %v868_v21 = vsel %vm215_vm3, %v866_v35, %v867_v42  ;;  %v908_v50 = vsel %vm258_vm4, %v906_v43, %v907_v44  ;;  %1008 = vmatpush.msra.mxu0 %v1671_v19  ;;  %v1685_v32 = vld [vmem:[%s3276_s2 + $0x3f0] sm:$0xff]  ;;  %v1684_v34 = vld [vmem:[%s3276_s2 + $0x3e8] sm:$0xff]  ;;  %v1667_v35 = vld [vmem:[%s3276_s2 + $0x360] sm:$0xff] }
 0x361   : > { %v1920_v51 = vpack.i.bf16 %v868_v21, %v908_v50  ;;  %v869_v53 = vrot.slane %v2722_v41, 1  ;;  %v909_v54 = vrot.slane %v2722_v41, 5  ;;  %v931_v55 = vrot.slane %v2722_v41, 7  ;;  %1030 = vmatpush.msrb.mxu2 %v1688_v18  ;;  %v1721_v19 = vld [vmem:[%s3276_s2 + $0x4f8] sm:$0xff] }
 0x362   : > { %1931 = vrot.lane.b32.xlu0 %v1930_v48, %s2045_s10  ;;  %1926 = vrot.lane.b32.xlu2 %v1925_v49, %s2047_s28  ;;  %v881_v12 = vsel %vm227_vm5, %v878_v39, %v880_v15  ;;  %v921_v56 = vsel %vm270_vm6, %v918_v40, %v920_v52  ;;  %v891_v37 = vrot.slane %v2722_v41, 3  ;;  %v900_v39 = vrot.slane %v2710_v33, 4 }
 0x363   : > { %1921 = vrot.lane.b32.xlu1 %v1920_v51, %s2046_s13  ;;  %v870_v57 = vsel %vm215_vm3, %v867_v42, %v869_v53  ;;  %v910_v20 = vsel %vm258_vm4, %v907_v44, %v909_v54  ;;  %v1940_v31 = vpack.i.bf16 %v881_v12, %v921_v56  ;;  %v932_v58 = vsel %vm282_vm2, %v929_v38, %v931_v55 }
 0x364   : > { %v1935_v59 = vpack.i.bf16 %v870_v57, %v910_v20  ;;  %v892_v60 = vsel %vm239_vm1, %v889_v36, %v891_v37  ;;  %1031 = vmatpush.msrb.mxu2 %v1687_v24  ;;  %1009 = vmatpush.msra.mxu0 %v1670_v27  ;;  %v1683_v36 = vld [vmem:[%s3276_s2 + $0x3e0] sm:$0xff]  ;;  %v899_v42 = vrot.slane %v2705_v26, 4  ;;  %v902_v54 = vrot.slane %v2722_v41, 4  ;;  %v1720_v24 = vld [vmem:[%s3276_s2 + $0x4f0] sm:$0xff] }
 0x365   : > { %1705 = vmatmul.msk.f32.gmra.mxu1 %vm294_vm7, %v2722_v41  ;;  %1213 = vmatpush.msra.mxu3 %v1721_v19  ;;  %v1709_v19 = vld [vmem:[%s3276_s2 + $0x498] sm:$0xff] }
 0x366   : > { %1032 = vmatpush.msrb.mxu2 %v1686_v28  ;;  %1010 = vmatpush.msra.mxu0 %v1669_v30  ;;  %v901_v47 = vsel %vm204_vm0, %v899_v42, %v900_v39 }
 0x367   : > { %1214 = vmatpush.msra.mxu3 %v1720_v24  ;;  %v1727_v24 = vld [vmem:[%s3276_s2 + $0x528] sm:$0xff] }
 0x368   : > { %1033 = vmatpush.msrb.mxu2 %v1685_v32  ;;  %1011 = vmatpush.msra.mxu0 %v1668_v13 }
 0x36a   : > { %935 = vrot.lane.b32.xlu0 %v932_v58, %s2045_s10  ;;  %1941 = vrot.lane.b32.xlu2 %v1940_v31, %s2047_s28 }
 0x36b   : > { %1936 = vrot.lane.b32.xlu1 %v1935_v59, %s2046_s13  ;;  %1034 = vmatpush.msrb.mxu2 %v1684_v34 }
 0x36c   : > { %1012 = vmatpush.msra.mxu0 %v1667_v35 }
 0x36d   : > { %1035 = vmatpush.msrb.mxu2 %v1683_v36 }
 0x373   : > { %895 = vrot.lane.b32.xlu1 %v892_v60, %s2045_s10 }
 0x3bc   : > { %v1927_v38 = vpop.permute.xlu2 %1926 }
 0x3bd   : > { %v1929_v45 = vunpack.i.h.bf16 %v1927_v38  ;;  %v1928_v46 = vunpack.i.l.bf16 %v1927_v38 }
 0x3c4   : > { %v1942_v55 = vpop.permute.xlu2 %1941 }
 0x3c5   : > { %v1943_v20 = vunpack.i.l.bf16 %v1942_v55  ;;  %v1944_v23 = vunpack.i.h.bf16 %v1942_v55 }
 0x3d4   : > { %v1932_v40 = vpop.permute.xlu0 %1931 }
 0x3d5   : > { %v1922_v43 = vpop.permute.xlu1 %1921  ;;  %v1934_v48 = vunpack.i.h.bf16 %v1932_v40  ;;  %v1933_v49 = vunpack.i.l.bf16 %v1932_v40 }
 0x3d6   : > { %v1924_v44 = vunpack.i.h.bf16 %v1922_v43  ;;  %v1923_v22 = vunpack.i.l.bf16 %v1922_v43 }
 0x3d8   : > { %v939_v21 = vsel %vm294_vm7, %v2705_v26, %v1924_v44  ;;  %v945_v50 = vsel %vm294_vm7, %v901_v47, %v1923_v22  ;;  %v903_v26 = vsel %vm204_vm0, %v900_v39, %v902_v54 }
 0x3d9   : > { %v941_v51 = vsel %vm297_vm8, %v939_v21, %v1929_v45  ;;  %v947_v15 = vsel %vm297_vm8, %v945_v50, %v1928_v46 }
 0x3da   : > { %v943_v52 = vsel %vm300_vm9, %v941_v51, %v1934_v48  ;;  %v949_v53 = vsel %vm300_vm9, %v947_v15, %v1933_v49  ;;  %v1060_v4 = vpop.f32.mrf.mxu1 }
 0x3db   : > { %1013 = vmatmul.f32.vlgmr.msra.gmra.mxu0 %v943_v52  ;;  %1036 = vmatmul.f32.vlgmr.msrb.gmra.mxu2 %v949_v53 }
 0x3dc   : > { %v936_v58 = vpop.permute.xlu0 %935 }
 0x3dd   : > { %v1937_v12 = vpop.permute.xlu1 %1936 }
 0x3de   : > { %v1939_v56 = vunpack.i.h.bf16 %v1937_v12  ;;  %v1938_v57 = vunpack.i.l.bf16 %v1937_v12 }
 0x3e0   : > { %v946_v31 = vsel %vm294_vm7, %v903_v26, %v1938_v57  ;;  %v940_v60 = vsel %vm294_vm7, %v2710_v33, %v1939_v56  ;;  %v1739_v33 = vld [vmem:[%s3276_s2 + $0x588] sm:$0xff] }
 0x3e1   : > { %v948_v59 = vsel %vm297_vm8, %v946_v31, %v1943_v20  ;;  %v942_v61 = vsel %vm297_vm8, %v940_v60, %v1944_v23  ;;  %1273 = vmatpush.msrb.mxu1 %v1739_v33  ;;  %v1735_v33 = vld [vmem:[%s3276_s2 + $0x568] sm:$0xff] }
 0x3e2   : > { %v950_v37 = vsel %vm300_vm9, %v948_v59, %v936_v58  ;;  %v1063_v18 = vpop.f32.mrf.mxu1 }
 0x3e3   : > { %1039 = vmatmul.f32.gmra.mxu2 %v950_v37  ;;  %1274 = vmatpush.msrb.mxu1 %v1738_v0  ;;  %v1716_v0 = vld [vmem:[%s3276_s2 + $0x4d0] sm:$0xff] }
 0x3e5   : > { %v896_v41 = vpop.permute.xlu1 %895 }
 0x3e6   : > { %v944_v62 = vsel %vm300_vm9, %v942_v61, %v896_v41  ;;  %v1719_v41 = vld [vmem:[%s3276_s2 + $0x4e8] sm:$0xff]  ;;  %v1718_v61 = vld [vmem:[%s3276_s2 + $0x4e0] sm:$0xff] }
 0x3e7   : > { %1016 = vmatmul.f32.gmra.mxu0 %v944_v62  ;;  %v1737_v62 = vld [vmem:[%s3276_s2 + $0x578] sm:$0xff]  ;;  %1215 = vmatpush.msra.mxu3 %v1719_v41 }
 0x3e8   : > { %1236 = vmatpush.msrb.mxu0 %v1737_v62  ;;  %v1778_v62 = vld [vmem:[%s3276_s2 + $0x6a8] sm:$0xff] }
 0x3e9   : > { %1216 = vmatpush.msra.mxu3 %v1718_v61 }
 0x3ea   : > { %1237 = vmatpush.msrb.mxu0 %v1736_v29  ;;  %v1777_v29 = vld [vmem:[%s3276_s2 + $0x6a0] sm:$0xff] }
 0x3eb   : > { %1217 = vmatpush.msra.mxu3 %v1717_v63  ;;  %v1979_v63 = vld [vmem:[%s3277_s3 + $0x4] ss:$0 sm:$0xff] }
 0x3ec   : > { %1238 = vmatpush.msrb.mxu0 %v1735_v33 }
 0x3ed   : > { %1218 = vmatpush.msra.mxu3 %v1716_v0 }
 0x458   : > { %v1014_v2 = vpop.f32.mrf.mxu0 }
 0x459   : > { %v1015_v3 = vadd.f32 %v1978_v1, %v1014_v2  ;;  %v1734_v2 = vld [vmem:[%s3276_s2 + $0x560] sm:$0xff] }
 0x45a   : > { %1239 = vmatpush.msrb.mxu0 %v1734_v2 }
 0x45e   : > { %v1037_v5 = vpop.f32.mrf.mxu2 }
 0x45f   : > { %v1038_v6 = vadd.f32 %v1037_v5, %v1015_v3  ;;  %v1733_v3 = vld [vmem:[%s3276_s2 + $0x558] sm:$0xff]  ;;  %v1732_v5 = vld [vmem:[%s3276_s2 + $0x550] sm:$0xff] }
 0x460   : > { %1240 = vmatpush.msrb.mxu0 %v1733_v3 }
 0x461   : > { %v1061_v7 = vadd.f32 %v1060_v4, %v1038_v6  ;;  %v1714_v4 = vld [vmem:[%s3276_s2 + $0x4c0] sm:$0xff]  ;;  %v1713_v6 = vld [vmem:[%s3276_s2 + $0x4b8] sm:$0xff] }
 0x462   : > { %1241 = vmatpush.msrb.mxu0 %v1732_v5 }
 0x463   : > { %v1066_v9 = vmax.f32 %v1061_v7, 0.0  ;;  %v1731_v7 = vld [vmem:[%s3276_s2 + $0x548] sm:$0xff] }
 0x464   : > { %v1017_v10 = vpop.f32.mrf.mxu0  ;;  %1242 = vmatpush.msrb.mxu0 %v1731_v7 }
 0x465   : > { %v2879_v11 = vadd.f32 %v1066_v9, %v2511_v8  ;;  %v1018_v14 = vadd.f32 %v1978_v1, %v1017_v10  ;;  %v1715_v1 = vld [vmem:[%s3276_s2 + $0x4c8] sm:$0xff]  ;;  %v1712_v9 = vld [vmem:[%s3276_s2 + $0x4b0] sm:$0xff] }
 0x466   : > { %v1040_v16 = vpop.f32.mrf.mxu2  ;;  %1219 = vmatpush.msra.mxu3 %v1715_v1  ;;  %v1711_v10 = vld [vmem:[%s3276_s2 + $0x4a8] sm:$0xff] }
 0x467   : > { %v1041_v17 = vadd.f32 %v1040_v16, %v1018_v14  ;;  %v1072_v27 = vrot.slane %v2879_v11, 4  ;;  %v1730_v14 = vld [vmem:[%s3276_s2 + $0x540] sm:$0xff]  ;;  %v1729_v16 = vld [vmem:[%s3276_s2 + $0x538] sm:$0xff] }
 0x468   : > { %1220 = vmatpush.msra.mxu3 %v1714_v4  ;;  %1243 = vmatpush.msrb.mxu0 %v1730_v14  ;;  %v1759_v14 = vld [vmem:[%s3276_s2 + $0x610] sm:$0xff] }
 0x469   : > { %v1064_v28 = vadd.f32 %v1063_v18, %v1041_v17  ;;  %v2889_v8 = vsel %vm204_vm0, 0.0, %v1072_v27  ;;  %v1710_v17 = vld [vmem:[%s3276_s2 + $0x4a0] sm:$0xff]  ;;  %v1728_v18 = vld [vmem:[%s3276_s2 + $0x530] sm:$0xff] }
 0x46a   : > { %v1104_v34 = vrot.slane %v2889_v8, 3  ;;  %v1093_v38 = vrot.slane %v2889_v8, 2  ;;  %v1082_v39 = vrot.slane %v2889_v8, 1  ;;  %v1144_v15 = vrot.slane %v2889_v8, 7  ;;  %1221 = vmatpush.msra.mxu3 %v1713_v6  ;;  %1244 = vmatpush.msrb.mxu0 %v1729_v16 }
 0x46b   : > { %v1067_v30 = vmax.f32 %v1064_v28, 0.0  ;;  %v1133_v56 = vrot.slane %v2889_v8, 6  ;;  %v1122_v57 = vrot.slane %v2889_v8, 5  ;;  %v1726_v28 = vld [vmem:[%s3276_s2 + $0x520] sm:$0xff] }
 0x46c   : > { %1222 = vmatpush.msra.mxu3 %v1712_v9  ;;  %1245 = vmatpush.msrb.mxu0 %v1728_v18 }
 0x46d   : > { %v2892_v32 = vadd.f32 %v1067_v30, %v2524_v25  ;;  %v1707_v30 = vld [vmem:[%s3276_s2 + $0x488] sm:$0xff] }
 0x46e   : > { %1223 = vmatpush.msra.mxu3 %v1711_v10  ;;  %1246 = vmatpush.msrb.mxu0 %v1727_v24  ;;  %v1760_v10 = vld [vmem:[%s3276_s2 + $0x618] sm:$0xff] }
 0x46f   : > { %v1073_v13 = vrot.slane %v2892_v32, 4  ;;  %1427 = vmatpush.msra.mxu2 %v1760_v10  ;;  %v1749_v10 = vld [vmem:[%s3276_s2 + $0x5c0] sm:$0xff] }
 0x470   : > { %1224 = vmatpush.msra.mxu3 %v1710_v17  ;;  %1247 = vmatpush.msrb.mxu0 %v1726_v28 }
 0x471   : > { %v2897_v35 = vsel %vm204_vm0, %v1072_v27, %v1073_v13  ;;  %v2900_v36 = vsel %vm204_vm0, %v1073_v13, 0.0  ;;  %v1708_v27 = vld [vmem:[%s3276_s2 + $0x490] sm:$0xff]  ;;  %v1725_v13 = vld [vmem:[%s3276_s2 + $0x518] sm:$0xff]  ;;  %1428 = vmatpush.msra.mxu2 %v1759_v14 }
 0x472   : > { %1743 = vmatmul.msk.f32.vlgmr.msrb.gmra.mxu1 %vm294_vm7, %v2897_v35  ;;  %v1105_v25 = vrot.slane %v2897_v35, 3  ;;  %v1094_v40 = vrot.slane %v2897_v35, 2  ;;  %v1096_v42 = vrot.slane %v2900_v36, 2  ;;  %v1083_v43 = vrot.slane %v2897_v35, 1  ;;  %1225 = vmatpush.msra.mxu3 %v1709_v19  ;;  %v1767_v14 = vld [vmem:[%s3276_s2 + $0x650] sm:$0xff] }
 0x473   : > { %v1085_v44 = vrot.slane %v2900_v36, 1  ;;  %v1107_v22 = vrot.slane %v2900_v36, 3  ;;  %v1145_v45 = vrot.slane %v2897_v35, 7  ;;  %v1134_v54 = vrot.slane %v2897_v35, 6  ;;  %1248 = vmatpush.msrb.mxu0 %v1725_v13 }
 0x474   : > { %v1106_v46 = vsel %vm239_vm1, %v1104_v34, %v1105_v25  ;;  %v1095_v47 = vsel %vm227_vm5, %v1093_v38, %v1094_v40  ;;  %v1097_v48 = vsel %vm227_vm5, %v1094_v40, %v1096_v42  ;;  %v1084_v49 = vsel %vm215_vm3, %v1082_v39, %v1083_v43  ;;  %1226 = vmatpush.msra.mxu3 %v1708_v27  ;;  %v1706_v34 = vld [vmem:[%s3276_s2 + $0x480] sm:$0xff]  ;;  %v1724_v38 = vld [vmem:[%s3276_s2 + $0x510] sm:$0xff]  ;;  %v1723_v39 = vld [vmem:[%s3276_s2 + $0x508] sm:$0xff] }
 0x475   : > { %1109 = vrot.lane.b32.xlu1 %v1106_v46, %s2045_s10  ;;  %v1950_v21 = vpack.i.bf16 %v1097_v48, %v1095_v47  ;;  %v1086_v50 = vsel %vm215_vm3, %v1083_v43, %v1085_v44  ;;  %v1108_v52 = vsel %vm239_vm1, %v1105_v25, %v1107_v22  ;;  %v1146_v53 = vsel %vm282_vm2, %v1144_v15, %v1145_v45  ;;  %v1722_v25 = vld [vmem:[%s3276_s2 + $0x500] sm:$0xff] }
 0x476   : > { %v1945_v51 = vpack.i.bf16 %v1086_v50, %v1084_v49  ;;  %v1955_v55 = vpack.i.bf16 %v1146_v53, %v1108_v52  ;;  %v1123_v12 = vrot.slane %v2897_v35, 5  ;;  %v1135_v20 = vsel %vm270_vm6, %v1133_v56, %v1134_v54  ;;  %1227 = vmatpush.msra.mxu3 %v1707_v30  ;;  %1249 = vmatpush.msrb.mxu0 %v1724_v38 }
 0x477   : > { %1951 = vrot.lane.b32.xlu0 %v1950_v21, %s2047_s28  ;;  %v1147_v31 = vrot.slane %v2900_v36, 7  ;;  %v1136_v58 = vrot.slane %v2900_v36, 6  ;;  %v1125_v59 = vrot.slane %v2900_v36, 5  ;;  %v1116_v46 = vrot.slane %v2897_v35, 4 }
 0x478   : > { %1946 = vrot.lane.b32.xlu2 %v1945_v51, %s2046_s13  ;;  %v1124_v26 = vsel %vm258_vm4, %v1122_v57, %v1123_v12  ;;  %1228 = vmatpush.msra.mxu3 %v1706_v34  ;;  %v1115_v21 = vrot.slane %v2889_v8, 4 }
 0x479   : > { %v1148_v37 = vsel %vm282_vm2, %v1145_v45, %v1147_v31  ;;  %v1137_v60 = vsel %vm270_vm6, %v1134_v54, %v1136_v58  ;;  %v1126_v23 = vsel %vm258_vm4, %v1123_v12, %v1125_v59  ;;  %1250 = vmatpush.msrb.mxu0 %v1723_v39 }
 0x47a   : > { %1744 = vmatmul.msk.f32.gmra.mxu1 %vm294_vm7, %v2900_v36  ;;  %v1117_v15 = vsel %vm204_vm0, %v1115_v21, %v1116_v46 }
 0x47b   : > { %1251 = vmatpush.msrb.mxu0 %v1722_v25 }
 0x47d   : > { %1956 = vrot.lane.b32.xlu1 %v1955_v55, %s2045_s10 }
 0x47f   : > { %1138 = vrot.lane.b32.xlu0 %v1135_v20, %s2047_s28 }
 0x480   : > { %1127 = vrot.lane.b32.xlu2 %v1124_v26, %s2046_s13 }
 0x485   : > { %1151 = vrot.lane.b32.xlu1 %v1148_v37, %s2045_s10 }
 0x487   : > { %1140 = vrot.lane.b32.xlu0 %v1137_v60, %s2047_s28 }
 0x488   : > { %1129 = vrot.lane.b32.xlu2 %v1126_v23, %s2046_s13 }
 0x4d2   : > { %v1947_v40 = vpop.permute.xlu2 %1946 }
 0x4d3   : > { %v1948_v42 = vunpack.i.l.bf16 %v1947_v40  ;;  %v1949_v50 = vunpack.i.h.bf16 %v1947_v40 }
 0x4d5   : > { %v1155_v45 = vsel %vm294_vm7, %v2889_v8, %v1948_v42  ;;  %v1156_v20 = vsel %vm294_vm7, %v2897_v35, %v1949_v50  ;;  %v1118_v8 = vrot.slane %v2900_v36, 4  ;;  %v1780_v35 = vld [vmem:[%s3276_s2 + $0x6b8] sm:$0xff]  ;;  %v1779_v36 = vld [vmem:[%s3276_s2 + $0x6b0] sm:$0xff] }
 0x4d6   : > { %1485 = vmatpush.msrb.mxu3 %v1780_v35  ;;  %v1775_v35 = vld [vmem:[%s3276_s2 + $0x690] sm:$0xff] }
 0x4d7   : > { %v1119_v59 = vsel %vm204_vm0, %v1116_v46, %v1118_v8 }
 0x4d8   : > { %1486 = vmatpush.msrb.mxu3 %v1779_v36  ;;  %v1756_v36 = vld [vmem:[%s3276_s2 + $0x5f8] sm:$0xff] }
 0x4da   : > { %v1128_v47 = vpop.permute.xlu2 %1127  ;;  %1487 = vmatpush.msrb.mxu3 %v1778_v62  ;;  %v1774_v62 = vld [vmem:[%s3276_s2 + $0x688] sm:$0xff] }
 0x4db   : > { %v1161_v54 = vsel %vm294_vm7, %v1117_v15, %v1128_v47 }
 0x4dc   : > { %1488 = vmatpush.msrb.mxu3 %v1777_v29  ;;  %v1755_v29 = vld [vmem:[%s3276_s2 + $0x5f0] sm:$0xff] }
 0x4e2   : > { %v1130_v58 = vpop.permute.xlu2 %1129 }
 0x4e3   : > { %v1162_v37 = vsel %vm294_vm7, %v1119_v59, %v1130_v58 }
 0x4e7   : > { %v1110_v43 = vpop.permute.xlu1 %1109 }
 0x4e9   : > { %v1952_v44 = vpop.permute.xlu0 %1951 }
 0x4ea   : > { %v1953_v22 = vunpack.i.l.bf16 %v1952_v44  ;;  %v1954_v52 = vunpack.i.h.bf16 %v1952_v44 }
 0x4ec   : > { %v1157_v48 = vsel %vm297_vm8, %v1155_v45, %v1953_v22  ;;  %v1158_v26 = vsel %vm297_vm8, %v1156_v20, %v1954_v52 }
 0x4ed   : > { %v1159_v49 = vsel %vm300_vm9, %v1157_v48, %v1110_v43 }
 0x4ee   : > { %1229 = vmatmul.f32.vlgmr.msra.gmra.mxu3 %v1159_v49 }
 0x4ef   : > { %v1957_v51 = vpop.permute.xlu1 %1956  ;;  %v1276_v2 = vpop.f32.mrf.mxu1 }
 0x4f0   : > { %v1959_v53 = vunpack.i.h.bf16 %v1957_v51  ;;  %v1958_v55 = vunpack.i.l.bf16 %v1957_v51 }
 0x4f1   : > { %v1139_v12 = vpop.permute.xlu0 %1138 }
 0x4f2   : > { %v1163_v56 = vsel %vm297_vm8, %v1161_v54, %v1139_v12  ;;  %v1160_v31 = vsel %vm300_vm9, %v1158_v26, %v1958_v55 }
 0x4f3   : > { %v1165_v57 = vsel %vm300_vm9, %v1163_v56, %v1959_v53 }
 0x4f4   : > { %1252 = vmatmul.f32.vlgmr.msrb.gmra.mxu0 %v1165_v57 }
 0x4f6   : > { %1232 = vmatmul.f32.gmra.mxu3 %v1160_v31 }
 0x4f7   : > { %v1152_v23 = vpop.permute.xlu1 %1151  ;;  %v1279_v18 = vpop.f32.mrf.mxu1 }
 0x4f9   : > { %v1141_v60 = vpop.permute.xlu0 %1140 }
 0x4fa   : > { %v1164_v41 = vsel %vm297_vm8, %v1162_v37, %v1141_v60 }
 0x4fb   : > { %v1166_v61 = vsel %vm300_vm9, %v1164_v41, %v1152_v23  ;;  %v1758_v23 = vld [vmem:[%s3276_s2 + $0x608] sm:$0xff]  ;;  %v1757_v41 = vld [vmem:[%s3276_s2 + $0x600] sm:$0xff] }
 0x4fc   : > { %1255 = vmatmul.f32.gmra.mxu0 %v1166_v61  ;;  %v1776_v61 = vld [vmem:[%s3276_s2 + $0x698] sm:$0xff]  ;;  %1429 = vmatpush.msra.mxu2 %v1758_v23 }
 0x4fd   : > { %1450 = vmatpush.msra.mxu1 %v1776_v61 }
 0x4fe   : > { %1430 = vmatpush.msra.mxu2 %v1757_v41 }
 0x4ff   : > { %1451 = vmatpush.msra.mxu1 %v1775_v35 }
 0x500   : > { %1431 = vmatpush.msra.mxu2 %v1756_v36 }
 0x501   : > { %1452 = vmatpush.msra.mxu1 %v1774_v62 }
 0x502   : > { %1432 = vmatpush.msra.mxu2 %v1755_v29 }
 0x571   : > { %v1230_v33 = vpop.f32.mrf.mxu3  ;;  %v1253_v0 = vpop.f32.mrf.mxu0 }
 0x572   : > { %v1231_v1 = vadd.f32 %v1979_v63, %v1230_v33  ;;  %v1773_v33 = vld [vmem:[%s3276_s2 + $0x680] sm:$0xff] }
 0x573   : > { %1453 = vmatpush.msra.mxu1 %v1773_v33 }
 0x574   : > { %v1254_v3 = vadd.f32 %v1253_v0, %v1231_v1  ;;  %v1772_v0 = vld [vmem:[%s3276_s2 + $0x678] sm:$0xff]  ;;  %v1753_v1 = vld [vmem:[%s3276_s2 + $0x5e0] sm:$0xff] }
 0x575   : > { %1454 = vmatpush.msra.mxu1 %v1772_v0 }
 0x576   : > { %v1277_v4 = vadd.f32 %v1276_v2, %v1254_v3  ;;  %v1771_v2 = vld [vmem:[%s3276_s2 + $0x670] sm:$0xff]  ;;  %v1752_v3 = vld [vmem:[%s3276_s2 + $0x5d8] sm:$0xff] }
 0x577   : > { %1455 = vmatpush.msra.mxu1 %v1771_v2 }
 0x578   : > { %v1282_v5 = vmax.f32 %v1277_v4, 0.0  ;;  %v1770_v4 = vld [vmem:[%s3276_s2 + $0x668] sm:$0xff] }
 0x579   : > { %v1233_v6 = vpop.f32.mrf.mxu3  ;;  %v1256_v9 = vpop.f32.mrf.mxu0  ;;  %1456 = vmatpush.msra.mxu1 %v1770_v4 }
 0x57a   : > { %v1234_v7 = vadd.f32 %v1979_v63, %v1233_v6  ;;  %v1286_v16 = vrot.slane %v1282_v5, 4  ;;  %v1754_v63 = vld [vmem:[%s3276_s2 + $0x5e8] sm:$0xff]  ;;  %v1751_v5 = vld [vmem:[%s3276_s2 + $0x5d0] sm:$0xff] }
 0x57b   : > { %1433 = vmatpush.msra.mxu2 %v1754_v63  ;;  %v1750_v6 = vld [vmem:[%s3276_s2 + $0x5c8] sm:$0xff] }
 0x57c   : > { %v1257_v17 = vadd.f32 %v1256_v9, %v1234_v7  ;;  %v3075_v24 = vsel %vm204_vm0, 0.0, %v1286_v16  ;;  %v1769_v7 = vld [vmem:[%s3276_s2 + $0x660] sm:$0xff]  ;;  %v1768_v9 = vld [vmem:[%s3276_s2 + $0x658] sm:$0xff] }
 0x57d   : > { %v1318_v30 = vrot.slane %v3075_v24, 3  ;;  %v1307_v38 = vrot.slane %v3075_v24, 2  ;;  %v1296_v39 = vrot.slane %v3075_v24, 1  ;;  %v1358_v15 = vrot.slane %v3075_v24, 7  ;;  %1434 = vmatpush.msra.mxu2 %v1753_v1  ;;  %1457 = vmatpush.msra.mxu1 %v1769_v7 }
 0x57e   : > { %v1280_v19 = vadd.f32 %v1279_v18, %v1257_v17  ;;  %v1347_v56 = vrot.slane %v3075_v24, 6  ;;  %v1336_v57 = vrot.slane %v3075_v24, 5  ;;  %v1766_v17 = vld [vmem:[%s3276_s2 + $0x648] sm:$0xff]  ;;  %v1747_v18 = vld [vmem:[%s3276_s2 + $0x5b0] sm:$0xff] }
 0x57f   : > { %1435 = vmatpush.msra.mxu2 %v1752_v3  ;;  %1458 = vmatpush.msra.mxu1 %v1768_v9 }
 0x580   : > { %v1283_v27 = vmax.f32 %v1280_v19, 0.0  ;;  %v1765_v19 = vld [vmem:[%s3276_s2 + $0x640] sm:$0xff] }
 0x581   : > { %1436 = vmatpush.msra.mxu2 %v1751_v5  ;;  %1459 = vmatpush.msra.mxu1 %v1767_v14 }
 0x582   : > { %v1287_v28 = vrot.slane %v1283_v27, 4  ;;  %v1746_v27 = vld [vmem:[%s3276_s2 + $0x5a8] sm:$0xff] }
 0x583   : > { %1437 = vmatpush.msra.mxu2 %v1750_v6  ;;  %1460 = vmatpush.msra.mxu1 %v1766_v17 }
 0x584   : > { %v3079_v13 = vsel %vm204_vm0, %v1286_v16, %v1287_v28  ;;  %v3082_v34 = vsel %vm204_vm0, %v1287_v28, 0.0  ;;  %v1748_v16 = vld [vmem:[%s3276_s2 + $0x5b8] sm:$0xff] }
 0x585   : > { %1782 = vmatmul.msk.f32.vlgmr.msrb.gmra.mxu3 %vm294_vm7, %v3079_v13  ;;  %v1319_v25 = vrot.slane %v3079_v13, 3  ;;  %v1308_v40 = vrot.slane %v3079_v13, 2  ;;  %v1310_v42 = vrot.slane %v3082_v34, 2  ;;  %v1297_v43 = vrot.slane %v3079_v13, 1  ;;  %1438 = vmatpush.msra.mxu2 %v1749_v10  ;;  %v1764_v28 = vld [vmem:[%s3276_s2 + $0x638] sm:$0xff] }
 0x586   : > { %v1299_v44 = vrot.slane %v3082_v34, 1  ;;  %v1321_v22 = vrot.slane %v3082_v34, 3  ;;  %v1359_v45 = vrot.slane %v3079_v13, 7  ;;  %v1348_v54 = vrot.slane %v3079_v13, 6  ;;  %1461 = vmatpush.msra.mxu1 %v1765_v19 }
 0x587   : > { %v1320_v46 = vsel %vm239_vm1, %v1318_v30, %v1319_v25  ;;  %v1309_v47 = vsel %vm227_vm5, %v1307_v38, %v1308_v40  ;;  %v1311_v48 = vsel %vm227_vm5, %v1308_v40, %v1310_v42  ;;  %v1298_v49 = vsel %vm215_vm3, %v1296_v39, %v1297_v43  ;;  %1439 = vmatpush.msra.mxu2 %v1748_v16  ;;  %v1745_v30 = vld [vmem:[%s3276_s2 + $0x5a0] sm:$0xff]  ;;  %v1763_v38 = vld [vmem:[%s3276_s2 + $0x630] sm:$0xff]  ;;  %v1762_v39 = vld [vmem:[%s3276_s2 + $0x628] sm:$0xff] }
 0x588   : > { %1323 = vrot.lane.b32.xlu1 %v1320_v46, %s2045_s10  ;;  %v1965_v21 = vpack.i.bf16 %v1311_v48, %v1309_v47  ;;  %v1300_v50 = vsel %vm215_vm3, %v1297_v43, %v1299_v44  ;;  %v1322_v52 = vsel %vm239_vm1, %v1319_v25, %v1321_v22  ;;  %v1360_v53 = vsel %vm282_vm2, %v1358_v15, %v1359_v45  ;;  %v1761_v25 = vld [vmem:[%s3276_s2 + $0x620] sm:$0xff] }
 0x589   : > { %v1960_v51 = vpack.i.bf16 %v1300_v50, %v1298_v49  ;;  %v1970_v55 = vpack.i.bf16 %v1360_v53, %v1322_v52  ;;  %v1337_v12 = vrot.slane %v3079_v13, 5  ;;  %v1349_v20 = vsel %vm270_vm6, %v1347_v56, %v1348_v54  ;;  %1440 = vmatpush.msra.mxu2 %v1747_v18  ;;  %1462 = vmatpush.msra.mxu1 %v1764_v28 }
 0x58a   : > { %1966 = vrot.lane.b32.xlu0 %v1965_v21, %s2047_s28  ;;  %v1361_v26 = vrot.slane %v3082_v34, 7  ;;  %v1350_v31 = vrot.slane %v3082_v34, 6  ;;  %v1339_v58 = vrot.slane %v3082_v34, 5  ;;  %v1330_v46 = vrot.slane %v3079_v13, 4 }
 0x58b   : > { %1961 = vrot.lane.b32.xlu2 %v1960_v51, %s2046_s13  ;;  %v1338_v8 = vsel %vm258_vm4, %v1336_v57, %v1337_v12  ;;  %1441 = vmatpush.msra.mxu2 %v1746_v27  ;;  %v1329_v21 = vrot.slane %v3075_v24, 4 }
 0x58c   : > { %v1362_v59 = vsel %vm282_vm2, %v1359_v45, %v1361_v26  ;;  %v1351_v37 = vsel %vm270_vm6, %v1348_v54, %v1350_v31  ;;  %v1340_v60 = vsel %vm258_vm4, %v1337_v12, %v1339_v58  ;;  %1463 = vmatpush.msra.mxu1 %v1763_v38 }
 0x58d   : > { %1783 = vmatmul.msk.f32.gmra.mxu3 %vm294_vm7, %v3082_v34  ;;  %1442 = vmatpush.msra.mxu2 %v1745_v30  ;;  %v1331_v15 = vsel %vm204_vm0, %v1329_v21, %v1330_v46 }
 0x58e   : > { %1464 = vmatpush.msra.mxu1 %v1762_v39 }
 0x590   : > { %1971 = vrot.lane.b32.xlu1 %v1970_v55, %s2045_s10  ;;  %1465 = vmatpush.msra.mxu1 %v1761_v25 }
 0x592   : > { %1352 = vrot.lane.b32.xlu0 %v1349_v20, %s2047_s28 }
 0x593   : > { %1341 = vrot.lane.b32.xlu2 %v1338_v8, %s2046_s13 }
 0x598   : > { %1365 = vrot.lane.b32.xlu1 %v1362_v59, %s2045_s10 }
 0x59a   : > { %1354 = vrot.lane.b32.xlu0 %v1351_v37, %s2047_s28  ;;  %s2001_s28 = scalar_lea.hbm %s3278_s4, 32 }
 0x59b   : > { %1343 = vrot.lane.b32.xlu2 %v1340_v60, %s2046_s13  ;;  %p2003_p1 = scmp.lt.s32.totalorder %s2001_s28, %s1997_s14 }
 0x59d   : > { %p2004_p2 = por %p2003_p1, %p2002_p0 }
 0x59f   : > { %p2005_p3 = pnand %p2004_p2, %p2000_p13 }
 0x5e5   : > { %v1962_v40 = vpop.permute.xlu2 %1961 }
 0x5e6   : > { %v1963_v42 = vunpack.i.l.bf16 %v1962_v40  ;;  %v1964_v50 = vunpack.i.h.bf16 %v1962_v40 }
 0x5e8   : > { %v1369_v45 = vsel %vm294_vm7, %v3075_v24, %v1963_v42  ;;  %v1370_v20 = vsel %vm294_vm7, %v3079_v13, %v1964_v50  ;;  %v1332_v24 = vrot.slane %v3082_v34, 4  ;;  %v1980_v34 = vld [vmem:[%s3277_s3 + $0x5] ss:$0 sm:$0xff] }
 0x5ea   : > { %v1333_v58 = vsel %vm204_vm0, %v1330_v46, %v1332_v24 }
 0x5ed   : > { %v1342_v47 = vpop.permute.xlu2 %1341 }
 0x5ee   : > { %v1375_v54 = vsel %vm294_vm7, %v1331_v15, %v1342_v47 }
 0x5f5   : > { %v1344_v31 = vpop.permute.xlu2 %1343 }
 0x5f6   : > { %v1376_v59 = vsel %vm294_vm7, %v1333_v58, %v1344_v31 }
 0x5fa   : > { %v1324_v43 = vpop.permute.xlu1 %1323 }
 0x5fc   : > { %v1967_v44 = vpop.permute.xlu0 %1966 }
 0x5fd   : > { %v1968_v22 = vunpack.i.l.bf16 %v1967_v44  ;;  %v1969_v52 = vunpack.i.h.bf16 %v1967_v44 }
 0x5ff   : > { %v1371_v48 = vsel %vm297_vm8, %v1369_v45, %v1968_v22  ;;  %v1372_v8 = vsel %vm297_vm8, %v1370_v20, %v1969_v52 }
 0x600   : > { %v1373_v49 = vsel %vm300_vm9, %v1371_v48, %v1324_v43 }
 0x601   : > { %1443 = vmatmul.f32.vlgmr.msra.gmra.mxu2 %v1373_v49 }
 0x602   : > { %v1972_v51 = vpop.permute.xlu1 %1971 }
 0x603   : > { %v1974_v53 = vunpack.i.h.bf16 %v1972_v51  ;;  %v1973_v55 = vunpack.i.l.bf16 %v1972_v51 }
 0x604   : > { %v1353_v12 = vpop.permute.xlu0 %1352 }
 0x605   : > { %v1377_v56 = vsel %vm297_vm8, %v1375_v54, %v1353_v12  ;;  %v1374_v26 = vsel %vm300_vm9, %v1372_v8, %v1973_v55 }
 0x606   : > { %v1379_v57 = vsel %vm300_vm9, %v1377_v56, %v1974_v53 }
 0x607   : > { %1466 = vmatmul.f32.vlgmr.msra.gmra.mxu1 %v1379_v57 }
 0x608   : > { %v1490_v36 = vpop.f32.mrf.mxu3 }
 0x609   : > { %1446 = vmatmul.f32.gmra.mxu2 %v1374_v26 }
 0x60a   : > { %v1366_v60 = vpop.permute.xlu1 %1365 }
 0x60c   : > { %v1355_v37 = vpop.permute.xlu0 %1354 }
 0x60d   : > { %v1378_v23 = vsel %vm297_vm8, %v1376_v59, %v1355_v37 }
 0x60e   : > { %v1380_v13 = vsel %vm300_vm9, %v1378_v23, %v1366_v60 }
 0x60f   : > { %1469 = vmatmul.f32.gmra.mxu1 %v1380_v13 }
 0x610   : > { %v1493_v4 = vpop.f32.mrf.mxu3 }
 0x684   : > { %v1444_v41 = vpop.f32.mrf.mxu2  ;;  %v1467_v61 = vpop.f32.mrf.mxu1 }
 0x685   : > { %v1445_v35 = vadd.f32 %v1980_v34, %v1444_v41 }
 0x687   : > { %v1468_v62 = vadd.f32 %v1467_v61, %v1445_v35 }
 0x689   : > { %v1491_v29 = vadd.f32 %v1490_v36, %v1468_v62 }
 0x68b   : > { %v1496_v63 = vmax.f32 %v1491_v29, 0.0 }
 0x68c   : > { %v1447_v33 = vpop.f32.mrf.mxu2  ;;  %v1470_v2 = vpop.f32.mrf.mxu1 }
 0x68d   : > { %v1498_v0 = vadd.f32 %v1496_v63, %v2879_v11  ;;  %v1448_v1 = vadd.f32 %v1980_v34, %v1447_v33 }
 0x68f   : > { %1500 = vst.msk [vmem:[%s190_s8] sm:$0xff] %vm294_vm7, %v1498_v0  ;;  %v1471_v3 = vadd.f32 %v1470_v2, %v1448_v1 }
 0x691   : > { %v1494_v5 = vadd.f32 %v1493_v4, %v1471_v3 }
 0x693   : > { %v1497_v6 = vmax.f32 %v1494_v5, 0.0 }
 0x695   : > { %v1499_v11 = vadd.f32 %v1497_v6, %v2892_v32 }
 0x697   : > { %1501 = vst.msk [vmem:[%s190_s8 + $0x8] sm:$0xff] %vm294_vm7, %v1499_v11 }
 0x698   : > { %2008 = shalt.err (!%p2005_p3)
}
 0x699   : > { %s2048_s23 = smov 128   ;;  %s2049_s29 = smov 8  }
 0x69a   : > { %1791 = dma.vmem_to_hbm [thread:$0]  (%p2113_p5), %s1516_s9, 256, %s1518_s11, %s1503_s19, %s2048_s23, %s2048_s23, %s2049_s29  }
 0x69b PF: > { %p1797_p4 = scmp.ge.s32.totalorder %s2043_s18, 2  ;;  %s1532_s30 = sand.u32 1, %s2031_s15  }
 0x69c   : > { %s1533_s5 = scalar_lea.sflag [#allocation3], %s1532_s30 }
 0x69d   : > { %p1794_p7 = pnand %p1797_p4, %p2117_p6 }
 0x69f   : > { %p1795_p8 = pneg %p1794_p7 }
 0x6a1   : > { %2026 = dma.done.wait (%p1795_p8), %s1533_s5, 256  }
 0x6a2   : > { %2028 = vsyncadd (%p1795_p8), %s1533_s5, 4294967040  ;;  %p14_p9 = scmp.ge.s32.totalorder %s2100_s21, 4   ;;  %s3281_s15 = smov %s2035_s16 }
 0x6a3   : > { %s3282_s16 = smov %s2039_s17  ;;  %s3283_s17 = smov %s2111_s24 }
 0x6a4   : > { %s3284_s18 = smov %s2100_s21  ;;  %16 = sbr.rel (!%p14_p9) target bundleno = 3 (0x3), region = 81 }
 0x6a9   :  { %1539 = vsyncpa [#allocation3], 1 }
 0x6aa   :  { %1541 = vsyncpa [#allocation3 + $0x1], 1 }

</bundles_post_ra>
